<compile_context>
chip_gen: v5e
topology: v5e:2x2
jax: 0.10.0
libtpu: 0.0.40
codegen_flags: <defaults>
</compile_context>

<pallas_src>
import jax
import jax.numpy as jnp
from jax.experimental import pallas as pl
from jax.experimental.pallas import tpu as pltpu

N = 8                     # tokens per graph
D_MODEL = 32
D_EDGE = 16
D_FFN = 64
N_HEAD = 4
HEAD_DIM = D_MODEL // N_HEAD
LN_EPS = 1e-5
NN = N * N                # 64 (i, j) pairs
EDGE_LANES = N * D_EDGE   # 128  -> edge row of one graph is a full (8,128) vreg

# ---- parameter-slab row layout (weights pre-transposed to [in, out]) --------
R_WNODE = 0      # [32, 96]   [w_mem_s | wq*scale | w_mem_t]
R_WMEM3 = 32     # [32, 80]   [w_pe | wk | wv]
R_WO = 64        # [32, 32]   out_proj
R_W1 = 96        # [32, 64]   linear1
R_W2 = 128       # [64, 32]   linear2
R_WEC = 192      # [128, 48]  [W_e tiled 8x vertically | COMPACT (8x stacked I16)]
R_SEL = 320      # [64, 16]   [SEL_J (r -> r%8) | SEL_I (r -> r//8)]
R_MASK = 384     # [64, 128]  MASK[r, j*16+d] = (j == r%8)
R_SPREAD = 448   # [16, 128]  SPREAD[d, j*16+d] = 1
R_SELIT = 464    # [8, 64]    SEL_I transposed
R_HSEL = 472     # [32, 4]    lane -> head selector
R_HSELT = 504    # [4, 32]    head -> lane selector
R_VEC = 512      # 16 bias / LayerNorm vectors (one per row, lane offset 0)
SLAB_ROWS = 528
SLAB_LANES = 128

(V_B_MEM, V_G_LNM, V_B_LNM,
 V_B_PE, V_G_LNP, V_B_LNP, V_G_LNE, V_B_LNE,
 V_BQ, V_BO, V_G_LN2, V_B_LN2,
 V_B1, V_B2, V_G_LN3, V_B_LN3) = range(16)


def _layer_norm(x, gamma, beta):
    mean = jnp.mean(x, axis=-1, keepdims=True)
    var = jnp.mean(jnp.square(x - mean), axis=-1, keepdims=True)
    return (x - mean) * jax.lax.rsqrt(var + LN_EPS) * gamma + beta


def sft_kernel(node_ref, edge_ref, slab_ref, x_out_ref, edge_out_ref):
    node = node_ref[...]              # [N, D_MODEL]
    edge_lane = edge_ref[...]         # [N, N*D_EDGE]  row i, lanes j*16+d = edge[i,j,d]

    def W(r0, rows, cols):            # weight / constant block from the slab
        return slab_ref[r0:r0 + rows, 0:cols]

    def vec(i, width):                # one packed bias/LN vector -> [1, width]
        r = R_VEC + i
        return slab_ref[r:r + 1, 0:width]

    def dot(a, b):
        return jnp.dot(a, b, preferred_element_type=jnp.float32)

    # ---- node projections: node @ [w_mem_s | wq/sqrt(hd) | w_mem_t] ---------
    nproj = dot(node, W(R_WNODE, D_MODEL, 3 * D_MODEL))            # [8, 96]

    # expand to the (i,j)-pair dimension (row r = i*N + j) with selector matmuls
    sel = W(R_SEL, NN, 2 * N)                                      # [64, 16]
    sel_j = sel[:, 0:N]                                            # picks node r%N
    sel_i = sel[:, N:2 * N]                                        # picks node r//N
    srcq_big = dot(sel_j, nproj[:, 0:2 * D_MODEL])                 # [64, 64]
    src_big = srcq_big[:, 0:D_MODEL]                               # src_x[i,j] = node[j]
    q_big = srcq_big[:, D_MODEL:2 * D_MODEL] + vec(V_BQ, D_MODEL)  # q per query node j
    tar_big = dot(sel_i, nproj[:, 2 * D_MODEL:3 * D_MODEL])        # tar_x[i,j] = node[i]

    # ---- lane-dense edge -> (i,j)-row layout, e_proj fused in one matmul ----
    mask = W(R_MASK, NN, EDGE_LANES)                               # [64, 128]
    edge_sel = dot(sel_i, edge_lane) * mask                        # [64, 128], block r%8 only
    ec = dot(edge_sel, W(R_WEC, EDGE_LANES, D_MODEL + D_EDGE))     # [64, 48]
    e_proj = ec[:, 0:D_MODEL]                                      # edge @ w_mem_e
    edge_flat = ec[:, D_MODEL:D_MODEL + D_EDGE]                    # edge[i,j,:] in row r

    # ---- _build_memory: memory = ReLU(LN(edge@We + src + tar + b)) ----------
    mem_pre = e_proj + src_big + tar_big + vec(V_B_MEM, D_MODEL)
    memory = jnp.maximum(
        _layer_norm(mem_pre, vec(V_G_LNM, D_MODEL), vec(V_B_LNM, D_MODEL)), 0.0)

    # ---- fused memory projections: memory @ [w_pe | wk | wv] ----------------
    mproj = dot(memory, W(R_WMEM3, D_MODEL, D_EDGE + 2 * D_MODEL))  # [64, 80]
    pe = mproj[:, 0:D_EDGE] + vec(V_B_PE, D_EDGE)
    k = mproj[:, D_EDGE:D_EDGE + D_MODEL]                 # bk dropped (shift-invariant)
    v = mproj[:, D_EDGE + D_MODEL:D_EDGE + 2 * D_MODEL]   # bv folded into bo on host

    # ---- edge update: edge = LN_edge(edge + ReLU(LN(pe))) -------------------
    pe = jnp.maximum(_layer_norm(pe, vec(V_G_LNP, D_EDGE), vec(V_B_LNP, D_EDGE)), 0.0)
    edge_out_flat = _layer_norm(edge_flat + pe,
                                vec(V_G_LNE, D_EDGE), vec(V_B_LNE, D_EDGE))   # [64, 16]
    # back to lane-dense [8, 128] via exact 0/1 matmul relayout (full-vreg store)
    spread = dot(edge_out_flat, W(R_SPREAD, D_EDGE, EDGE_LANES)) * mask        # [64, 128]
    edge_out_ref[...] = dot(W(R_SELIT, N, NN), spread)                         # [8, 128]

    # ---- multi-head attention, all heads at once (heads on lanes) -----------
    hsel = W(R_HSEL, D_MODEL, N_HEAD)                      # [32, 4]
    hsel_t = W(R_HSELT, N_HEAD, D_MODEL)                   # [4, 32]
    scores = dot(q_big * k, hsel)                          # [64, 4]  (r = s*N + b)
    s3 = scores.reshape(N, N, N_HEAD)                      # [s, b, h]
    s3 = s3 - jnp.max(s3, axis=0, keepdims=True)
    e3 = jnp.exp(s3)
    attn = e3 * pl.reciprocal(jnp.sum(e3, axis=0, keepdims=True), approx=True)
    a_big = dot(attn.reshape(NN, N_HEAD), hsel_t)          # [64, 32]
    ctx = jnp.sum((a_big * v).reshape(N, N, D_MODEL), axis=0)        # [b, D_MODEL]
    attn_out = dot(ctx, W(R_WO, D_MODEL, D_MODEL)) + vec(V_BO, D_MODEL)

    # ---- residual + norm2, feed-forward, norm3 (dropout = identity, eval) ---
    x1 = _layer_norm(node + attn_out, vec(V_G_LN2, D_MODEL), vec(V_B_LN2, D_MODEL))
    h1 = jnp.maximum(dot(x1, W(R_W1, D_MODEL, D_FFN)) + vec(V_B1, D_FFN), 0.0)
    ff = dot(h1, W(R_W2, D_FFN, D_MODEL)) + vec(V_B2, D_MODEL)
    x_out_ref[...] = _layer_norm(x1 + ff, vec(V_G_LN3, D_MODEL), vec(V_B_LN3, D_MODEL))


def sft_layer(node, edge, slab):
    """node: [B, N, D_MODEL], edge: [B, N, N, D_EDGE] -> (x, edge) batched."""
    B = node.shape[0]
    edge_lane = edge.reshape(B, N, N * D_EDGE)        # contiguous host reshape (free)
    x_out, edge_out = pl.pallas_call(
        sft_kernel,
        grid=(B,),
        out_shape=(jax.ShapeDtypeStruct((B, N, D_MODEL), jnp.float32),
                   jax.ShapeDtypeStruct((B, N, N * D_EDGE), jnp.float32)),
        in_specs=[
            pl.BlockSpec((None, N, D_MODEL), lambda b: (b, 0, 0)),
            pl.BlockSpec((None, N, N * D_EDGE), lambda b: (b, 0, 0)),
            # constant index_map -> slab DMA'd once, stays VMEM-resident
            pl.BlockSpec((SLAB_ROWS, SLAB_LANES), lambda b: (0, 0)),
        ],
        out_specs=(
            pl.BlockSpec((None, N, D_MODEL), lambda b: (b, 0, 0)),
            pl.BlockSpec((None, N, N * D_EDGE), lambda b: (b, 0, 0)),
        ),
        compiler_params=pltpu.CompilerParams(
            dimension_semantics=("parallel",)),        # shards batch across v7x's 2 TCs
    )(node, edge_lane, slab)
    return x_out, edge_out.reshape(B, N, N, D_EDGE)


def init_params(key):
    """Original (unpacked) module parameters, used by the pure-JAX reference."""
    def w(k, shape, scale=0.1):
        return (scale * jax.random.normal(k, shape)).astype(jnp.float32)
    ones = lambda n: jnp.ones((1, n), jnp.float32)
    zeros = lambda n: jnp.zeros((1, n), jnp.float32)
    ks = iter(jax.random.split(key, 20))
    return (
        w(next(ks), (D_EDGE, D_MODEL)),        # w_mem_e   (edge slice of proj_memory)
        w(next(ks), (D_MODEL, D_MODEL)),       # w_mem_s   (src slice)
        w(next(ks), (D_MODEL, D_MODEL)),       # w_mem_t   (tar slice)
        w(next(ks), (1, D_MODEL)),             # b_mem
        ones(D_MODEL), zeros(D_MODEL),         # LN in proj_memory
        w(next(ks), (D_MODEL, D_EDGE)),        # w_pe      (proj_edge)
        w(next(ks), (1, D_EDGE)),              # b_pe
        ones(D_EDGE), zeros(D_EDGE),           # LN in proj_edge
        ones(D_EDGE), zeros(D_EDGE),           # norm_edge
        w(next(ks), (D_MODEL, D_MODEL)),       # wq
        w(next(ks), (D_MODEL, D_MODEL)),       # wk
        w(next(ks), (D_MODEL, D_MODEL)),       # wv
        w(next(ks), (1, D_MODEL)),             # bq
        w(next(ks), (1, D_MODEL)),             # bk
        w(next(ks), (1, D_MODEL)),             # bv
        w(next(ks), (D_MODEL, D_MODEL)),       # wo (out_proj)
        w(next(ks), (1, D_MODEL)),             # bo
        ones(D_MODEL), zeros(D_MODEL),         # norm2
        w(next(ks), (D_MODEL, D_FFN)),         # linear1
        w(next(ks), (1, D_FFN)),               # b1
        w(next(ks), (D_FFN, D_MODEL)),         # linear2
        w(next(ks), (1, D_MODEL)),             # b2
        ones(D_MODEL), zeros(D_MODEL),         # norm3
    )


def pack_params(p):
    """Pack parameters + relayout/selector constants into one [528, 128] slab.

    Exact host-side folds: 1/sqrt(head_dim) into wq/bq, bv into bo
    (bo' = bo + bv@wo), bk dropped (softmax shift-invariance)."""
    (w_mem_e, w_mem_s, w_mem_t, b_mem, g_lnm, b_lnm,
     w_pe, b_pe, g_lnp, b_lnp, g_lne, b_lne,
     wq, wk, wv, bq, bk, bv, wo, bo, g_ln2, b_ln2,
     w1, b1, w2, b2, g_ln3, b_ln3) = p
    del bk                                                  # exact: shift-invariant
    scale = 1.0 / (HEAD_DIM ** 0.5)

    slab = jnp.zeros((SLAB_ROWS, SLAB_LANES), jnp.float32)

    def put(s, r0, block):
        return s.at[r0:r0 + block.shape[0], 0:block.shape[1]].set(
            block.astype(jnp.float32))

    # dense weights
    slab = put(slab, R_WNODE, jnp.concatenate([w_mem_s, wq * scale, w_mem_t], axis=1))
    slab = put(slab, R_WMEM3, jnp.concatenate([w_pe, wk, wv], axis=1))
    slab = put(slab, R_WO, wo)
    slab = put(slab, R_W1, w1)
    slab = put(slab, R_W2, w2)

    # [W_e tiled 8x vertically | COMPACT] : maps masked lane-dense edge rows to
    # [e_proj | edge_flat] in one matmul.
    we_tiled = jnp.tile(w_mem_e, (N, 1))                               # [128, 32]
    compact = jnp.tile(jnp.eye(D_EDGE, dtype=jnp.float32), (N, 1))     # [128, 16]
    slab = put(slab, R_WEC, jnp.concatenate([we_tiled, compact], axis=1))

    # selector / relayout constants
    r = jnp.arange(NN)
    lanes = jnp.arange(EDGE_LANES)
    sel_j = (r[:, None] % N == jnp.arange(N)[None, :]).astype(jnp.float32)    # [64, 8]
    sel_i = (r[:, None] // N == jnp.arange(N)[None, :]).astype(jnp.float32)   # [64, 8]
    slab = put(slab, R_SEL, jnp.concatenate([sel_j, sel_i], axis=1))
    mask = (r[:, None] % N == (lanes[None, :] // D_EDGE)).astype(jnp.float32)  # [64,128]
    slab = put(slab, R_MASK, mask)
    spread = (jnp.arange(D_EDGE)[:, None] ==
              (lanes[None, :] % D_EDGE)).astype(jnp.float32)                   # [16,128]
    slab = put(slab, R_SPREAD, spread)
    slab = put(slab, R_SELIT, sel_i.T)                                         # [8, 64]

    # head selectors (lane c belongs to head c // HEAD_DIM)
    hsel = (jnp.arange(D_MODEL)[:, None] // HEAD_DIM ==
            jnp.arange(N_HEAD)[None, :]).astype(jnp.float32)                   # [32, 4]
    slab = put(slab, R_HSEL, hsel)
    slab = put(slab, R_HSELT, hsel.T)

    vecs = [b_mem, g_lnm, b_lnm,
            b_pe, g_lnp, b_lnp, g_lne, b_lne,
            bq * scale, bo + bv @ wo, g_ln2, b_ln2,
            b1, b2, g_ln3, b_ln3]
    for i, vv in enumerate(vecs):
        slab = put(slab, R_VEC + i, vv.reshape(1, -1))
    return slab


def ref_forward(node, edge, p):
    """Pure-JAX reference for a single graph, mirroring the PyTorch module."""
    (w_mem_e, w_mem_s, w_mem_t, b_mem, g_lnm, b_lnm,
     w_pe, b_pe, g_lnp, b_lnp, g_lne, b_lne,
     wq, wk, wv, bq, bk, bv, wo, bo, g_ln2, b_ln2,
     w1, b1, w2, b2, g_ln3, b_ln3) = p

    def ln(x, g, b):
        m = jnp.mean(x, -1, keepdims=True)
        v = jnp.mean((x - m) ** 2, -1, keepdims=True)
        return (x - m) / jnp.sqrt(v + LN_EPS) * g[0] + b[0]

    n = node.shape[0]
    src = jnp.broadcast_to(node[None, :, :], (n, n, D_MODEL))
    tar = jnp.broadcast_to(node[:, None, :], (n, n, D_MODEL))
    w_mem = jnp.concatenate([w_mem_e, w_mem_s, w_mem_t], axis=0)
    cat = jnp.concatenate([edge, src, tar], axis=-1)
    memory = jax.nn.relu(ln(cat @ w_mem + b_mem[0], g_lnm, b_lnm))
    edge_new = ln(edge + jax.nn.relu(ln(memory @ w_pe + b_pe[0], g_lnp, b_lnp)),
                  g_lne, b_lne)
    q = (node @ wq + bq[0]).reshape(n, N_HEAD, HEAD_DIM)
    k = (memory @ wk + bk[0]).reshape(n, n, N_HEAD, HEAD_DIM)
    v = (memory @ wv + bv[0]).reshape(n, n, N_HEAD, HEAD_DIM)
    scores = jnp.einsum('bhd,sbhd->hbs', q, k) / (HEAD_DIM ** 0.5)
    attn = jax.nn.softmax(scores, axis=-1)
    out = jnp.einsum('hbs,sbhd->bhd', attn, v).reshape(n, D_MODEL)
    attn_out = out @ wo + bo[0]
    x1 = ln(node + attn_out, g_ln2, b_ln2)
    ff = jax.nn.relu(x1 @ w1 + b1[0]) @ w2 + b2[0]
    return ln(x1 + ff, g_ln3, b_ln3), edge_new


if __name__ == "__main__":
    key = jax.random.PRNGKey(0)
    k_node, k_edge, k_params = jax.random.split(key, 3)
    B = 4
    node = jax.random.normal(k_node, (B, N, D_MODEL), dtype=jnp.float32)
    edge = jax.random.normal(k_edge, (B, N, N, D_EDGE), dtype=jnp.float32)
    params = init_params(k_params)
    slab = pack_params(params)

    x_out, edge_out = sft_layer(node, edge, slab)
    x_out = jax.block_until_ready(x_out)
    edge_out = jax.block_until_ready(edge_out)
    assert x_out.shape == (B, N, D_MODEL) and edge_out.shape == (B, N, N, D_EDGE)

    for b in range(B):
        x_ref, edge_ref = ref_forward(node[b], edge[b], params)
        assert jnp.allclose(x_out[b], x_ref, atol=2e-2, rtol=2e-2), f"x mismatch {b}"
        assert jnp.allclose(edge_out[b], edge_ref, atol=2e-2, rtol=2e-2), f"edge mismatch {b}"
    print("KERNEL_OK")
</pallas_src>

<mosaic_0001>
module attributes {stable_mosaic.version = 11 : i64} {
  func.func @sft_kernel(%arg0: i32, %arg1: memref<1x8x32xf32, #tpu.memory_space<vmem>>, %arg2: memref<1x8x128xf32, #tpu.memory_space<vmem>>, %arg3: memref<528x128xf32, #tpu.memory_space<vmem>>, %arg4: memref<1x8x32xf32, #tpu.memory_space<vmem>>, %arg5: memref<1x8x128xf32, #tpu.memory_space<vmem>>) attributes {dimension_semantics = [#tpu.dimension_semantics<parallel>], iteration_bounds = array<i64: 4>, scalar_prefetch = 0 : i64, scratch_operands = 0 : i64, tpu.core_type = #tpu.core_type<tc>, window_params = [{transform_indices = @transform_0, window_bounds = array<i64: 1, 8, 32>}, {transform_indices = @transform_1, window_bounds = array<i64: 1, 8, 128>}, {pipeline_mode = #tpu.pipeline_mode<synchronous>, transform_indices = @transform_2, window_bounds = array<i64: 528, 128>}, {transform_indices = @transform_3, window_bounds = array<i64: 1, 8, 32>}, {transform_indices = @transform_4, window_bounds = array<i64: 1, 8, 128>}]} {
    %c0 = arith.constant 0 : index
    %c0_0 = arith.constant 0 : index
    %c0_1 = arith.constant 0 : index
    %0 = vector.load %arg1[%c0, %c0_0, %c0_1] : memref<1x8x32xf32, #tpu.memory_space<vmem>>, vector<1x8x32xf32>
    %1 = vector.shape_cast %0 : vector<1x8x32xf32> to vector<8x32xf32>
    %c0_2 = arith.constant 0 : index
    %c0_3 = arith.constant 0 : index
    %c0_4 = arith.constant 0 : index
    %2 = vector.load %arg2[%c0_2, %c0_3, %c0_4] : memref<1x8x128xf32, #tpu.memory_space<vmem>>, vector<1x8x128xf32>
    %3 = vector.shape_cast %2 : vector<1x8x128xf32> to vector<8x128xf32>
    %c0_5 = arith.constant 0 : index
    %c0_6 = arith.constant 0 : index
    %4 = vector.load %arg3[%c0_5, %c0_6] : memref<528x128xf32, #tpu.memory_space<vmem>>, vector<32x96xf32>
    %cst = arith.constant dense<0.000000e+00> : vector<8x96xf32>
    %5 = tpu.matmul %1, %4, %cst {dimension_numbers = #tpu.dot_dimension_numbers<[1], [0], [0], [1], [0, 0, 1, 1], [], []>} : vector<8x32xf32>, vector<32x96xf32>, vector<8x96xf32> -> vector<8x96xf32>
    %c320 = arith.constant 320 : index
    %c0_7 = arith.constant 0 : index
    %6 = vector.load %arg3[%c320, %c0_7] : memref<528x128xf32, #tpu.memory_space<vmem>>, vector<64x16xf32>
    %7 = vector.extract_strided_slice %6 {offsets = [0, 0], sizes = [64, 8], strides = [1, 1]} : vector<64x16xf32> to vector<64x8xf32>
    %8 = vector.extract_strided_slice %6 {offsets = [0, 8], sizes = [64, 8], strides = [1, 1]} : vector<64x16xf32> to vector<64x8xf32>
    %9 = vector.extract_strided_slice %5 {offsets = [0, 0], sizes = [8, 64], strides = [1, 1]} : vector<8x96xf32> to vector<8x64xf32>
    %cst_8 = arith.constant dense<0.000000e+00> : vector<64x64xf32>
    %10 = tpu.matmul %7, %9, %cst_8 {dimension_numbers = #tpu.dot_dimension_numbers<[1], [0], [0], [1], [0, 0, 1, 1], [], []>} : vector<64x8xf32>, vector<8x64xf32>, vector<64x64xf32> -> vector<64x64xf32>
    %11 = vector.extract_strided_slice %10 {offsets = [0, 0], sizes = [64, 32], strides = [1, 1]} : vector<64x64xf32> to vector<64x32xf32>
    %12 = vector.extract_strided_slice %10 {offsets = [0, 32], sizes = [64, 32], strides = [1, 1]} : vector<64x64xf32> to vector<64x32xf32>
    %c520 = arith.constant 520 : index
    %c0_9 = arith.constant 0 : index
    %13 = vector.load %arg3[%c520, %c0_9] : memref<528x128xf32, #tpu.memory_space<vmem>>, vector<1x32xf32>
    %14 = vector.broadcast %13 : vector<1x32xf32> to vector<64x32xf32>
    %15 = arith.addf %12, %14 : vector<64x32xf32>
    %16 = vector.extract_strided_slice %5 {offsets = [0, 64], sizes = [8, 32], strides = [1, 1]} : vector<8x96xf32> to vector<8x32xf32>
    %cst_10 = arith.constant dense<0.000000e+00> : vector<64x32xf32>
    %17 = tpu.matmul %8, %16, %cst_10 {dimension_numbers = #tpu.dot_dimension_numbers<[1], [0], [0], [1], [0, 0, 1, 1], [], []>} : vector<64x8xf32>, vector<8x32xf32>, vector<64x32xf32> -> vector<64x32xf32>
    %c384 = arith.constant 384 : index
    %c0_11 = arith.constant 0 : index
    %18 = vector.load %arg3[%c384, %c0_11] : memref<528x128xf32, #tpu.memory_space<vmem>>, vector<64x128xf32>
    %cst_12 = arith.constant dense<0.000000e+00> : vector<64x128xf32>
    %19 = tpu.matmul %8, %3, %cst_12 {dimension_numbers = #tpu.dot_dimension_numbers<[1], [0], [0], [1], [0, 0, 1, 1], [], []>} : vector<64x8xf32>, vector<8x128xf32>, vector<64x128xf32> -> vector<64x128xf32>
    %20 = arith.mulf %19, %18 : vector<64x128xf32>
    %c192 = arith.constant 192 : index
    %c0_13 = arith.constant 0 : index
    %21 = vector.load %arg3[%c192, %c0_13] : memref<528x128xf32, #tpu.memory_space<vmem>>, vector<128x48xf32>
    %cst_14 = arith.constant dense<0.000000e+00> : vector<64x48xf32>
    %22 = tpu.matmul %20, %21, %cst_14 {dimension_numbers = #tpu.dot_dimension_numbers<[1], [0], [0], [1], [0, 0, 1, 1], [], []>} : vector<64x128xf32>, vector<128x48xf32>, vector<64x48xf32> -> vector<64x48xf32>
    %23 = vector.extract_strided_slice %22 {offsets = [0, 0], sizes = [64, 32], strides = [1, 1]} : vector<64x48xf32> to vector<64x32xf32>
    %24 = vector.extract_strided_slice %22 {offsets = [0, 32], sizes = [64, 16], strides = [1, 1]} : vector<64x48xf32> to vector<64x16xf32>
    %25 = arith.addf %23, %11 : vector<64x32xf32>
    %26 = arith.addf %25, %17 : vector<64x32xf32>
    %c512 = arith.constant 512 : index
    %c0_15 = arith.constant 0 : index
    %27 = vector.load %arg3[%c512, %c0_15] : memref<528x128xf32, #tpu.memory_space<vmem>>, vector<1x32xf32>
    %28 = vector.broadcast %27 : vector<1x32xf32> to vector<64x32xf32>
    %29 = arith.addf %26, %28 : vector<64x32xf32>
    %c513 = arith.constant 513 : index
    %c0_16 = arith.constant 0 : index
    %30 = vector.load %arg3[%c513, %c0_16] : memref<528x128xf32, #tpu.memory_space<vmem>>, vector<1x32xf32>
    %c514 = arith.constant 514 : index
    %c0_17 = arith.constant 0 : index
    %31 = vector.load %arg3[%c514, %c0_17] : memref<528x128xf32, #tpu.memory_space<vmem>>, vector<1x32xf32>
    %cst_18 = arith.constant dense<0.000000e+00> : vector<64xf32>
    %32 = vector.multi_reduction <add>, %29, %cst_18 [1] : vector<64x32xf32> to vector<64xf32>
    %33 = vector.shape_cast %32 : vector<64xf32> to vector<64x1xf32>
    %cst_19 = arith.constant 3.200000e+01 : f32
    %34 = vector.broadcast %cst_19 : f32 to vector<64x1xf32>
    %35 = arith.divf %33, %34 : vector<64x1xf32>
    %36 = vector.broadcast %35 : vector<64x1xf32> to vector<64x32xf32>
    %37 = arith.subf %29, %36 : vector<64x32xf32>
    %38 = arith.mulf %37, %37 : vector<64x32xf32>
    %cst_20 = arith.constant dense<0.000000e+00> : vector<64xf32>
    %39 = vector.multi_reduction <add>, %38, %cst_20 [1] : vector<64x32xf32> to vector<64xf32>
    %40 = vector.shape_cast %39 : vector<64xf32> to vector<64x1xf32>
    %cst_21 = arith.constant 3.200000e+01 : f32
    %41 = vector.broadcast %cst_21 : f32 to vector<64x1xf32>
    %42 = arith.divf %40, %41 : vector<64x1xf32>
    %43 = vector.broadcast %35 : vector<64x1xf32> to vector<64x32xf32>
    %44 = arith.subf %29, %43 : vector<64x32xf32>
    %cst_22 = arith.constant 9.99999974E-6 : f32
    %45 = vector.broadcast %cst_22 : f32 to vector<64x1xf32>
    %46 = arith.addf %42, %45 : vector<64x1xf32>
    %47 = math.rsqrt %46 : vector<64x1xf32>
    %48 = vector.broadcast %47 : vector<64x1xf32> to vector<64x32xf32>
    %49 = arith.mulf %44, %48 : vector<64x32xf32>
    %50 = vector.broadcast %30 : vector<1x32xf32> to vector<64x32xf32>
    %51 = arith.mulf %49, %50 : vector<64x32xf32>
    %52 = vector.broadcast %31 : vector<1x32xf32> to vector<64x32xf32>
    %53 = arith.addf %51, %52 : vector<64x32xf32>
    %cst_23 = arith.constant 0.000000e+00 : f32
    %54 = vector.broadcast %cst_23 : f32 to vector<64x32xf32>
    %55 = arith.maximumf %53, %54 : vector<64x32xf32>
    %c32 = arith.constant 32 : index
    %c0_24 = arith.constant 0 : index
    %56 = vector.load %arg3[%c32, %c0_24] : memref<528x128xf32, #tpu.memory_space<vmem>>, vector<32x80xf32>
    %cst_25 = arith.constant dense<0.000000e+00> : vector<64x80xf32>
    %57 = tpu.matmul %55, %56, %cst_25 {dimension_numbers = #tpu.dot_dimension_numbers<[1], [0], [0], [1], [0, 0, 1, 1], [], []>} : vector<64x32xf32>, vector<32x80xf32>, vector<64x80xf32> -> vector<64x80xf32>
    %58 = vector.extract_strided_slice %57 {offsets = [0, 0], sizes = [64, 16], strides = [1, 1]} : vector<64x80xf32> to vector<64x16xf32>
    %c515 = arith.constant 515 : index
    %c0_26 = arith.constant 0 : index
    %59 = vector.load %arg3[%c515, %c0_26] : memref<528x128xf32, #tpu.memory_space<vmem>>, vector<1x16xf32>
    %60 = vector.broadcast %59 : vector<1x16xf32> to vector<64x16xf32>
    %61 = arith.addf %58, %60 : vector<64x16xf32>
    %62 = vector.extract_strided_slice %57 {offsets = [0, 16], sizes = [64, 32], strides = [1, 1]} : vector<64x80xf32> to vector<64x32xf32>
    %63 = vector.extract_strided_slice %57 {offsets = [0, 48], sizes = [64, 32], strides = [1, 1]} : vector<64x80xf32> to vector<64x32xf32>
    %c516 = arith.constant 516 : index
    %c0_27 = arith.constant 0 : index
    %64 = vector.load %arg3[%c516, %c0_27] : memref<528x128xf32, #tpu.memory_space<vmem>>, vector<1x16xf32>
    %c517 = arith.constant 517 : index
    %c0_28 = arith.constant 0 : index
    %65 = vector.load %arg3[%c517, %c0_28] : memref<528x128xf32, #tpu.memory_space<vmem>>, vector<1x16xf32>
    %cst_29 = arith.constant dense<0.000000e+00> : vector<64xf32>
    %66 = vector.multi_reduction <add>, %61, %cst_29 [1] : vector<64x16xf32> to vector<64xf32>
    %67 = vector.shape_cast %66 : vector<64xf32> to vector<64x1xf32>
    %cst_30 = arith.constant 1.600000e+01 : f32
    %68 = vector.broadcast %cst_30 : f32 to vector<64x1xf32>
    %69 = arith.divf %67, %68 : vector<64x1xf32>
    %70 = vector.broadcast %69 : vector<64x1xf32> to vector<64x16xf32>
    %71 = arith.subf %61, %70 : vector<64x16xf32>
    %72 = arith.mulf %71, %71 : vector<64x16xf32>
    %cst_31 = arith.constant dense<0.000000e+00> : vector<64xf32>
    %73 = vector.multi_reduction <add>, %72, %cst_31 [1] : vector<64x16xf32> to vector<64xf32>
    %74 = vector.shape_cast %73 : vector<64xf32> to vector<64x1xf32>
    %cst_32 = arith.constant 1.600000e+01 : f32
    %75 = vector.broadcast %cst_32 : f32 to vector<64x1xf32>
    %76 = arith.divf %74, %75 : vector<64x1xf32>
    %77 = vector.broadcast %69 : vector<64x1xf32> to vector<64x16xf32>
    %78 = arith.subf %61, %77 : vector<64x16xf32>
    %cst_33 = arith.constant 9.99999974E-6 : f32
    %79 = vector.broadcast %cst_33 : f32 to vector<64x1xf32>
    %80 = arith.addf %76, %79 : vector<64x1xf32>
    %81 = math.rsqrt %80 : vector<64x1xf32>
    %82 = vector.broadcast %81 : vector<64x1xf32> to vector<64x16xf32>
    %83 = arith.mulf %78, %82 : vector<64x16xf32>
    %84 = vector.broadcast %64 : vector<1x16xf32> to vector<64x16xf32>
    %85 = arith.mulf %83, %84 : vector<64x16xf32>
    %86 = vector.broadcast %65 : vector<1x16xf32> to vector<64x16xf32>
    %87 = arith.addf %85, %86 : vector<64x16xf32>
    %cst_34 = arith.constant 0.000000e+00 : f32
    %88 = vector.broadcast %cst_34 : f32 to vector<64x16xf32>
    %89 = arith.maximumf %87, %88 : vector<64x16xf32>
    %90 = arith.addf %24, %89 : vector<64x16xf32>
    %c518 = arith.constant 518 : index
    %c0_35 = arith.constant 0 : index
    %91 = vector.load %arg3[%c518, %c0_35] : memref<528x128xf32, #tpu.memory_space<vmem>>, vector<1x16xf32>
    %c519 = arith.constant 519 : index
    %c0_36 = arith.constant 0 : index
    %92 = vector.load %arg3[%c519, %c0_36] : memref<528x128xf32, #tpu.memory_space<vmem>>, vector<1x16xf32>
    %cst_37 = arith.constant dense<0.000000e+00> : vector<64xf32>
    %93 = vector.multi_reduction <add>, %90, %cst_37 [1] : vector<64x16xf32> to vector<64xf32>
    %94 = vector.shape_cast %93 : vector<64xf32> to vector<64x1xf32>
    %cst_38 = arith.constant 1.600000e+01 : f32
    %95 = vector.broadcast %cst_38 : f32 to vector<64x1xf32>
    %96 = arith.divf %94, %95 : vector<64x1xf32>
    %97 = vector.broadcast %96 : vector<64x1xf32> to vector<64x16xf32>
    %98 = arith.subf %90, %97 : vector<64x16xf32>
    %99 = arith.mulf %98, %98 : vector<64x16xf32>
    %cst_39 = arith.constant dense<0.000000e+00> : vector<64xf32>
    %100 = vector.multi_reduction <add>, %99, %cst_39 [1] : vector<64x16xf32> to vector<64xf32>
    %101 = vector.shape_cast %100 : vector<64xf32> to vector<64x1xf32>
    %cst_40 = arith.constant 1.600000e+01 : f32
    %102 = vector.broadcast %cst_40 : f32 to vector<64x1xf32>
    %103 = arith.divf %101, %102 : vector<64x1xf32>
    %104 = vector.broadcast %96 : vector<64x1xf32> to vector<64x16xf32>
    %105 = arith.subf %90, %104 : vector<64x16xf32>
    %cst_41 = arith.constant 9.99999974E-6 : f32
    %106 = vector.broadcast %cst_41 : f32 to vector<64x1xf32>
    %107 = arith.addf %103, %106 : vector<64x1xf32>
    %108 = math.rsqrt %107 : vector<64x1xf32>
    %109 = vector.broadcast %108 : vector<64x1xf32> to vector<64x16xf32>
    %110 = arith.mulf %105, %109 : vector<64x16xf32>
    %111 = vector.broadcast %91 : vector<1x16xf32> to vector<64x16xf32>
    %112 = arith.mulf %110, %111 : vector<64x16xf32>
    %113 = vector.broadcast %92 : vector<1x16xf32> to vector<64x16xf32>
    %114 = arith.addf %112, %113 : vector<64x16xf32>
    %c448 = arith.constant 448 : index
    %c0_42 = arith.constant 0 : index
    %115 = vector.load %arg3[%c448, %c0_42] : memref<528x128xf32, #tpu.memory_space<vmem>>, vector<16x128xf32>
    %cst_43 = arith.constant dense<0.000000e+00> : vector<64x128xf32>
    %116 = tpu.matmul %114, %115, %cst_43 {dimension_numbers = #tpu.dot_dimension_numbers<[1], [0], [0], [1], [0, 0, 1, 1], [], []>} : vector<64x16xf32>, vector<16x128xf32>, vector<64x128xf32> -> vector<64x128xf32>
    %117 = arith.mulf %116, %18 : vector<64x128xf32>
    %c464 = arith.constant 464 : index
    %c0_44 = arith.constant 0 : index
    %118 = vector.load %arg3[%c464, %c0_44] : memref<528x128xf32, #tpu.memory_space<vmem>>, vector<8x64xf32>
    %cst_45 = arith.constant dense<0.000000e+00> : vector<8x128xf32>
    %119 = tpu.matmul %118, %117, %cst_45 {dimension_numbers = #tpu.dot_dimension_numbers<[1], [0], [0], [1], [0, 0, 1, 1], [], []>} : vector<8x64xf32>, vector<64x128xf32>, vector<8x128xf32> -> vector<8x128xf32>
    %c0_46 = arith.constant 0 : index
    %c0_47 = arith.constant 0 : index
    %c0_48 = arith.constant 0 : index
    %120 = vector.load %arg5[%c0_46, %c0_47, %c0_48] : memref<1x8x128xf32, #tpu.memory_space<vmem>>, vector<1x8x128xf32>
    %121 = vector.shape_cast %120 : vector<1x8x128xf32> to vector<8x128xf32>
    %122 = vector.shape_cast %119 : vector<8x128xf32> to vector<1x8x128xf32>
    tpu.vector_store %arg5[%c0_46, %c0_47, %c0_48], %122 {strides = array<i32>} : memref<1x8x128xf32, #tpu.memory_space<vmem>>, vector<1x8x128xf32>,
    %c472 = arith.constant 472 : index
    %c0_49 = arith.constant 0 : index
    %123 = vector.load %arg3[%c472, %c0_49] : memref<528x128xf32, #tpu.memory_space<vmem>>, vector<32x4xf32>
    %c504 = arith.constant 504 : index
    %c0_50 = arith.constant 0 : index
    %124 = vector.load %arg3[%c504, %c0_50] : memref<528x128xf32, #tpu.memory_space<vmem>>, vector<4x32xf32>
    %125 = arith.mulf %15, %62 : vector<64x32xf32>
    %cst_51 = arith.constant dense<0.000000e+00> : vector<64x4xf32>
    %126 = tpu.matmul %125, %123, %cst_51 {dimension_numbers = #tpu.dot_dimension_numbers<[1], [0], [0], [1], [0, 0, 1, 1], [], []>} : vector<64x32xf32>, vector<32x4xf32>, vector<64x4xf32> -> vector<64x4xf32>
    %127 = vector.shape_cast %126 : vector<64x4xf32> to vector<8x8x4xf32>
    %cst_52 = arith.constant dense<0xFF800000> : vector<8x4xf32>
    %128 = vector.multi_reduction <maximumf>, %127, %cst_52 [0] : vector<8x8x4xf32> to vector<8x4xf32>
    %129 = vector.shape_cast %128 : vector<8x4xf32> to vector<1x8x4xf32>
    %130 = vector.broadcast %129 : vector<1x8x4xf32> to vector<8x8x4xf32>
    %131 = arith.subf %127, %130 : vector<8x8x4xf32>
    %132 = math.exp %131 : vector<8x8x4xf32>
    %cst_53 = arith.constant dense<0.000000e+00> : vector<8x4xf32>
    %133 = vector.multi_reduction <add>, %132, %cst_53 [0] : vector<8x8x4xf32> to vector<8x4xf32>
    %134 = vector.shape_cast %133 : vector<8x4xf32> to vector<1x8x4xf32>
    %135 = tpu.reciprocal %134 {approx = true} : vector<1x8x4xf32> -> vector<1x8x4xf32>
    %136 = vector.broadcast %135 : vector<1x8x4xf32> to vector<8x8x4xf32>
    %137 = arith.mulf %132, %136 : vector<8x8x4xf32>
    %138 = vector.shape_cast %137 : vector<8x8x4xf32> to vector<64x4xf32>
    %cst_54 = arith.constant dense<0.000000e+00> : vector<64x32xf32>
    %139 = tpu.matmul %138, %124, %cst_54 {dimension_numbers = #tpu.dot_dimension_numbers<[1], [0], [0], [1], [0, 0, 1, 1], [], []>} : vector<64x4xf32>, vector<4x32xf32>, vector<64x32xf32> -> vector<64x32xf32>
    %140 = arith.mulf %139, %63 : vector<64x32xf32>
    %141 = vector.shape_cast %140 : vector<64x32xf32> to vector<8x8x32xf32>
    %cst_55 = arith.constant dense<0.000000e+00> : vector<8x32xf32>
    %142 = vector.multi_reduction <add>, %141, %cst_55 [0] : vector<8x8x32xf32> to vector<8x32xf32>
    %c64 = arith.constant 64 : index
    %c0_56 = arith.constant 0 : index
    %143 = vector.load %arg3[%c64, %c0_56] : memref<528x128xf32, #tpu.memory_space<vmem>>, vector<32x32xf32>
    %cst_57 = arith.constant dense<0.000000e+00> : vector<8x32xf32>
    %144 = tpu.matmul %142, %143, %cst_57 {dimension_numbers = #tpu.dot_dimension_numbers<[1], [0], [0], [1], [0, 0, 1, 1], [], []>} : vector<8x32xf32>, vector<32x32xf32>, vector<8x32xf32> -> vector<8x32xf32>
    %c521 = arith.constant 521 : index
    %c0_58 = arith.constant 0 : index
    %145 = vector.load %arg3[%c521, %c0_58] : memref<528x128xf32, #tpu.memory_space<vmem>>, vector<1x32xf32>
    %146 = vector.broadcast %145 : vector<1x32xf32> to vector<8x32xf32>
    %147 = arith.addf %144, %146 : vector<8x32xf32>
    %148 = arith.addf %1, %147 : vector<8x32xf32>
    %c522 = arith.constant 522 : index
    %c0_59 = arith.constant 0 : index
    %149 = vector.load %arg3[%c522, %c0_59] : memref<528x128xf32, #tpu.memory_space<vmem>>, vector<1x32xf32>
    %c523 = arith.constant 523 : index
    %c0_60 = arith.constant 0 : index
    %150 = vector.load %arg3[%c523, %c0_60] : memref<528x128xf32, #tpu.memory_space<vmem>>, vector<1x32xf32>
    %cst_61 = arith.constant dense<0.000000e+00> : vector<8xf32>
    %151 = vector.multi_reduction <add>, %148, %cst_61 [1] : vector<8x32xf32> to vector<8xf32>
    %152 = vector.shape_cast %151 : vector<8xf32> to vector<8x1xf32>
    %cst_62 = arith.constant 3.200000e+01 : f32
    %153 = vector.broadcast %cst_62 : f32 to vector<8x1xf32>
    %154 = arith.divf %152, %153 : vector<8x1xf32>
    %155 = vector.broadcast %154 : vector<8x1xf32> to vector<8x32xf32>
    %156 = arith.subf %148, %155 : vector<8x32xf32>
    %157 = arith.mulf %156, %156 : vector<8x32xf32>
    %cst_63 = arith.constant dense<0.000000e+00> : vector<8xf32>
    %158 = vector.multi_reduction <add>, %157, %cst_63 [1] : vector<8x32xf32> to vector<8xf32>
    %159 = vector.shape_cast %158 : vector<8xf32> to vector<8x1xf32>
    %cst_64 = arith.constant 3.200000e+01 : f32
    %160 = vector.broadcast %cst_64 : f32 to vector<8x1xf32>
    %161 = arith.divf %159, %160 : vector<8x1xf32>
    %162 = vector.broadcast %154 : vector<8x1xf32> to vector<8x32xf32>
    %163 = arith.subf %148, %162 : vector<8x32xf32>
    %cst_65 = arith.constant 9.99999974E-6 : f32
    %164 = vector.broadcast %cst_65 : f32 to vector<8x1xf32>
    %165 = arith.addf %161, %164 : vector<8x1xf32>
    %166 = math.rsqrt %165 : vector<8x1xf32>
    %167 = vector.broadcast %166 : vector<8x1xf32> to vector<8x32xf32>
    %168 = arith.mulf %163, %167 : vector<8x32xf32>
    %169 = vector.broadcast %149 : vector<1x32xf32> to vector<8x32xf32>
    %170 = arith.mulf %168, %169 : vector<8x32xf32>
    %171 = vector.broadcast %150 : vector<1x32xf32> to vector<8x32xf32>
    %172 = arith.addf %170, %171 : vector<8x32xf32>
    %c96 = arith.constant 96 : index
    %c0_66 = arith.constant 0 : index
    %173 = vector.load %arg3[%c96, %c0_66] : memref<528x128xf32, #tpu.memory_space<vmem>>, vector<32x64xf32>
    %cst_67 = arith.constant dense<0.000000e+00> : vector<8x64xf32>
    %174 = tpu.matmul %172, %173, %cst_67 {dimension_numbers = #tpu.dot_dimension_numbers<[1], [0], [0], [1], [0, 0, 1, 1], [], []>} : vector<8x32xf32>, vector<32x64xf32>, vector<8x64xf32> -> vector<8x64xf32>
    %c524 = arith.constant 524 : index
    %c0_68 = arith.constant 0 : index
    %175 = vector.load %arg3[%c524, %c0_68] : memref<528x128xf32, #tpu.memory_space<vmem>>, vector<1x64xf32>
    %176 = vector.broadcast %175 : vector<1x64xf32> to vector<8x64xf32>
    %177 = arith.addf %174, %176 : vector<8x64xf32>
    %cst_69 = arith.constant 0.000000e+00 : f32
    %178 = vector.broadcast %cst_69 : f32 to vector<8x64xf32>
    %179 = arith.maximumf %177, %178 : vector<8x64xf32>
    %c128 = arith.constant 128 : index
    %c0_70 = arith.constant 0 : index
    %180 = vector.load %arg3[%c128, %c0_70] : memref<528x128xf32, #tpu.memory_space<vmem>>, vector<64x32xf32>
    %cst_71 = arith.constant dense<0.000000e+00> : vector<8x32xf32>
    %181 = tpu.matmul %179, %180, %cst_71 {dimension_numbers = #tpu.dot_dimension_numbers<[1], [0], [0], [1], [0, 0, 1, 1], [], []>} : vector<8x64xf32>, vector<64x32xf32>, vector<8x32xf32> -> vector<8x32xf32>
    %c525 = arith.constant 525 : index
    %c0_72 = arith.constant 0 : index
    %182 = vector.load %arg3[%c525, %c0_72] : memref<528x128xf32, #tpu.memory_space<vmem>>, vector<1x32xf32>
    %183 = vector.broadcast %182 : vector<1x32xf32> to vector<8x32xf32>
    %184 = arith.addf %181, %183 : vector<8x32xf32>
    %185 = arith.addf %172, %184 : vector<8x32xf32>
    %c526 = arith.constant 526 : index
    %c0_73 = arith.constant 0 : index
    %186 = vector.load %arg3[%c526, %c0_73] : memref<528x128xf32, #tpu.memory_space<vmem>>, vector<1x32xf32>
    %c527 = arith.constant 527 : index
    %c0_74 = arith.constant 0 : index
    %187 = vector.load %arg3[%c527, %c0_74] : memref<528x128xf32, #tpu.memory_space<vmem>>, vector<1x32xf32>
    %cst_75 = arith.constant dense<0.000000e+00> : vector<8xf32>
    %188 = vector.multi_reduction <add>, %185, %cst_75 [1] : vector<8x32xf32> to vector<8xf32>
    %189 = vector.shape_cast %188 : vector<8xf32> to vector<8x1xf32>
    %cst_76 = arith.constant 3.200000e+01 : f32
    %190 = vector.broadcast %cst_76 : f32 to vector<8x1xf32>
    %191 = arith.divf %189, %190 : vector<8x1xf32>
    %192 = vector.broadcast %191 : vector<8x1xf32> to vector<8x32xf32>
    %193 = arith.subf %185, %192 : vector<8x32xf32>
    %194 = arith.mulf %193, %193 : vector<8x32xf32>
    %cst_77 = arith.constant dense<0.000000e+00> : vector<8xf32>
    %195 = vector.multi_reduction <add>, %194, %cst_77 [1] : vector<8x32xf32> to vector<8xf32>
    %196 = vector.shape_cast %195 : vector<8xf32> to vector<8x1xf32>
    %cst_78 = arith.constant 3.200000e+01 : f32
    %197 = vector.broadcast %cst_78 : f32 to vector<8x1xf32>
    %198 = arith.divf %196, %197 : vector<8x1xf32>
    %199 = vector.broadcast %191 : vector<8x1xf32> to vector<8x32xf32>
    %200 = arith.subf %185, %199 : vector<8x32xf32>
    %cst_79 = arith.constant 9.99999974E-6 : f32
    %201 = vector.broadcast %cst_79 : f32 to vector<8x1xf32>
    %202 = arith.addf %198, %201 : vector<8x1xf32>
    %203 = math.rsqrt %202 : vector<8x1xf32>
    %204 = vector.broadcast %203 : vector<8x1xf32> to vector<8x32xf32>
    %205 = arith.mulf %200, %204 : vector<8x32xf32>
    %206 = vector.broadcast %186 : vector<1x32xf32> to vector<8x32xf32>
    %207 = arith.mulf %205, %206 : vector<8x32xf32>
    %208 = vector.broadcast %187 : vector<1x32xf32> to vector<8x32xf32>
    %209 = arith.addf %207, %208 : vector<8x32xf32>
    %c0_80 = arith.constant 0 : index
    %c0_81 = arith.constant 0 : index
    %c0_82 = arith.constant 0 : index
    %210 = vector.load %arg4[%c0_80, %c0_81, %c0_82] : memref<1x8x32xf32, #tpu.memory_space<vmem>>, vector<1x8x32xf32>
    %211 = vector.shape_cast %210 : vector<1x8x32xf32> to vector<8x32xf32>
    %212 = vector.shape_cast %209 : vector<8x32xf32> to vector<1x8x32xf32>
    tpu.vector_store %arg4[%c0_80, %c0_81, %c0_82], %212 {strides = array<i32>} : memref<1x8x32xf32, #tpu.memory_space<vmem>>, vector<1x8x32xf32>,
    return
  }
  func.func @transform_0(%arg0: i32) -> (i32, i32, i32) {
    %c0_i32 = arith.constant 0 : i32
    %c0_i32_0 = arith.constant 0 : i32
    %c0_i32_1 = arith.constant 0 : i32
    return %arg0, %c0_i32, %c0_i32_0 : i32, i32, i32
  }
  func.func @transform_1(%arg0: i32) -> (i32, i32, i32) {
    %c0_i32 = arith.constant 0 : i32
    %c0_i32_0 = arith.constant 0 : i32
    %c0_i32_1 = arith.constant 0 : i32
    return %arg0, %c0_i32, %c0_i32_0 : i32, i32, i32
  }
  func.func @transform_2(%arg0: i32) -> (i32, i32) {
    %c0_i32 = arith.constant 0 : i32
    %c0_i32_0 = arith.constant 0 : i32
    %c0_i32_1 = arith.constant 0 : i32
    return %c0_i32, %c0_i32_0 : i32, i32
  }
  func.func @transform_3(%arg0: i32) -> (i32, i32, i32) {
    %c0_i32 = arith.constant 0 : i32
    %c0_i32_0 = arith.constant 0 : i32
    %c0_i32_1 = arith.constant 0 : i32
    return %arg0, %c0_i32, %c0_i32_0 : i32, i32, i32
  }
  func.func @transform_4(%arg0: i32) -> (i32, i32, i32) {
    %c0_i32 = arith.constant 0 : i32
    %c0_i32_0 = arith.constant 0 : i32
    %c0_i32_1 = arith.constant 0 : i32
    return %arg0, %c0_i32, %c0_i32_0 : i32, i32, i32
  }
}

</mosaic_0001>

<bundles_post_ra>
// kernel: tpu_custom_call.1
= control target key start
LH: loop header
LB: loop body
LE: loop exit
PB: predicated region body
PF: predicated region fallthrough
CT: control target
= control target key end

     0   :  { %s3497_s0 = inlined_call_operand.hbm [shape: f32[4,8,32], index: 0, kind: input, shape index: {}]   ;;  %s3498_s1 = inlined_call_operand.hbm [shape: f32[4,8,128], index: 1, kind: input, shape index: {}]   ;;  %s3499_s2 = inlined_call_operand.hbm [shape: f32[528,128], index: 2, kind: input, shape index: {}]   ;;  %s3500_s3 = inlined_call_operand.hbm [shape: f32[4,8,32], index: 3, kind: output, shape index: {0}]   ;;  %s3501_s4 = inlined_call_operand.hbm [shape: f32[4,8,128], index: 4, kind: output, shape index: {1}]  }
   0x1   :  { %3503 = sst [smem:[#allocation18_spill]] %s3499_s2 }
   0x2   :  { %10 = vsyncpa [#allocation3], 0 }
   0x3   :  { %12 = vsyncpa [#allocation3 + $0x1], 0 }
   0x4   :  { %13 = vsyncpa [#allocation6], 0 }
   0x5   :  { %15 = vsyncpa [#allocation6 + $0x1], 0 }
   0x6   :  { %16 = vsyncpa [#allocation4], 0 }
   0x7   :  { %18 = vsyncpa [#allocation4 + $0x1], 0 }
   0x8   :  { %19 = vsyncpa [#allocation10], 0 }
   0x9   :  { %21 = vsyncpa [#allocation10 + $0x1], 0  ;;  %s2694_s15 = smov 0   ;;  %s2696_s16 = smov 0  }
   0xa   :  { %s2698_s17 = smov 0   ;;  %s2700_s18 = smov 0  }
   0xb LB: > { %3504 = sst [smem:[#allocation16_spill]] %s2652_s17  ;;  %s2718_s22 = sadd.s32 4294967295, %s2656_s18   ;;  %s2656_s18 = sphi %s2700_s18, %s3517_s18   ;;  %s2652_s17 = sphi %s2698_s17, %s3514_s17   ;;  %s2648_s16 = sphi %s2696_s16, %s3516_s16   ;;  %s2644_s15 = sphi %s2694_s15, %s3515_s15  }
   0xc   : > { %s3505_s2 = sld [smem:[#allocation18_spill]]  ;;  %p2171_p0 = scmp.ge.s32.totalorder %s2656_s18, 1 }
   0xd   : > { %p48_p1 = scmp.eq.s32.totalorder %s2718_s22, 0  ;;  %p157_p2 = scmp.lt.s32.totalorder %s2656_s18, 5 }
   0xe   : > { %s2658_s24 = smov [#allocation7]   ;;  %s2659_s26 = smov 128  }
   0xf   : > { %p2723_p3 = pnand %p2171_p0, %p157_p2  ;;  %s170_s25 = sshll.u32 %s2658_s24, 4  ;;  %s171_s25 = int_to_ptr.vmem [resolvable:$true] %s170_s25 }
  0x10   : > { %s2660_s27 = smov 8   ;;  %s2170_s28 = sadd.s32 4294967294, %s2656_s18  }
  0x11   : > { %p2296_p4 = pneg %p2723_p3  ;;  %s2733_s29 = sadd.s32 1, %s2656_s18  }
  0x12   : > { %s168_s21 = sshll.u32 %s3505_s2, 4  ;;  %s34_s30 = sadd.s32 1, %s2652_s17  ;;  %s169_s21 = int_to_ptr.hbm [resolvable:$true] %s168_s21 }
  0x13   : > { %p2297_p5 = pnand %p2296_p4, %p48_p1  ;;  %s31_s5 = ssub.s32 %s2656_s18, %s2733_s29 }
  0x14   : > { %p41_p6 = scmp.ne.s32.totalorder %s2652_s17, %s2648_s16  ;;  %p32_p7 = scmp.eq.s32.totalorder %s31_s5, 0 }
  0x15   : > { %2299 = dma.hbm_to_vmem [thread:$0]  (!%p2297_p5), %s169_s21, 8448, %s171_s25, [#allocation6], %s2659_s26, %s2659_s26, %s2660_s27  }
  0x16   : > { %p42_p8 = scmp.eq.s32.totalorder %s2656_s18, 0  ;;  %p47_p9 = scmp.ne.s32.totalorder %s2648_s16, %s2644_s15 }
  0x17   : > { %p118_p10 = scmp.eq.s32.totalorder %s2718_s22, 3  ;;  %p124_p0 = scmp.eq.s32.totalorder %s2170_s28, 3 }
  0x18   : > { %s2745_s6 = scalar_select %p32_p7, %s2652_s17, %s34_s30  }
  0x19   : > { %p2747_p11 = por %p42_p8, %p41_p6  ;;  %p2753_p12 = por %p48_p1, %p47_p9 }
  0x1a   : > { %3507 = sst [smem:[#allocation17_spill]] %s2745_s6  ;;  %p2757_p13 = por %p118_p10, %p41_p6 }
  0x1b   : > { %p2315_p2 = scmp.lt.s32.totalorder %s2656_s18, 4  ;;  %s184_s10 = sand.u32 1, %s2652_s17  }
  0x1c   : > { %p2763_p4 = por %p124_p0, %p47_p9  ;;  %s2174_s12 = sshll.u32 %s184_s10, 3 }
  0x1d   : > { %s2175_s13 = sshll.u32 %s2656_s18, 3  ;;  %s188_s24 = scalar_lea.vmem [#allocation2], %s2174_s12 }
  0x1e   : > { %s192_s20 = scalar_lea.hbm %s3497_s0, %s2175_s13  ;;  %s196_s25 = sshll.u32 %s188_s24, 4  ;;  %s197_s25 = int_to_ptr.vmem [resolvable:$true] %s196_s25 }
  0x1f   : > { %s194_s21 = sshll.u32 %s192_s20, 4  ;;  %p2773_p5 = pnand %p2315_p2, %p2747_p11  ;;  %s195_s21 = int_to_ptr.hbm [resolvable:$true] %s194_s21 }
  0x20   : > { %s211_s30 = scalar_lea.hbm %s3498_s1, %s2175_s13  ;;  %s203_s5 = sand.u32 1, %s2656_s18  }
  0x21   : > { %s185_s2 = scalar_lea.sflag [#allocation3], %s184_s10  ;;  %s2490_s14 = sshra.s32 %s195_s21, 4  ;;  %s2491_s14 = int_to_ptr.hbm [resolvable:$true] %s2490_s14 }
  0x22   : > { %s2492_s19 = scalar_lea.hbm %s2491_s14, 8  ;;  %p2494_p7 = pneg %p2773_p5 }
  0x23   : > { %p2493_p6 = scmp.ne.s32.totalorder %s2491_s14, %s2492_s19  ;;  %s2497_s24 = scalar_lea.hbm %s3497_s0, 32 }
  0x24   : > { %p2498_p10 = scmp.lt.s32.totalorder %s2491_s14, %s3497_s0  ;;  %p2499_p11 = scmp.lt.s32.totalorder %s2497_s24, %s2492_s19 }
  0x25   : > { %p2495_p8 = pnand %p2494_p7, %p2493_p6 }
  0x26   : > { %p2500_p0 = por %p2499_p11, %p2498_p10 }
  0x27   : > { %p2496_p9 = pneg %p2495_p8 }
  0x29   : > { %p2501_p2 = pnand %p2500_p0, %p2496_p9 }
  0x2b   : > { %2504 = shalt.err (!%p2501_p2)
}
  0x2c   : > { %2303 = dma.hbm_to_vmem [thread:$0]  (!%p2773_p5), %s195_s21, 128, %s197_s25, %s185_s2  }
  0x2d   : > { %s213_s10 = sshll.u32 %s211_s30, 4  ;;  %s207_s13 = scalar_lea.vmem [#allocation5], %s2174_s12  ;;  %s214_s10 = int_to_ptr.hbm [resolvable:$true] %s213_s10 }
  0x2e   : > { %s215_s6 = sshll.u32 %s207_s13, 4  ;;  %s204_s17 = scalar_lea.sflag [#allocation6], %s203_s5  ;;  %s216_s6 = int_to_ptr.vmem [resolvable:$true] %s215_s6 }
  0x2f   : > { %s2520_s7 = sshra.s32 %s214_s10, 4  ;;  %s2527_s24 = scalar_lea.hbm %s3498_s1, 32  ;;  %s2521_s7 = int_to_ptr.hbm [resolvable:$true] %s2520_s7 }
  0x30   : > { %s2522_s20 = scalar_lea.hbm %s2521_s7, 8  ;;  %p2528_p9 = scmp.lt.s32.totalorder %s2521_s7, %s3498_s1 }
  0x31   : > { %p2523_p6 = scmp.ne.s32.totalorder %s2521_s7, %s2522_s20  ;;  %p2529_p11 = scmp.lt.s32.totalorder %s2527_s24, %s2522_s20 }
  0x33   : > { %p2525_p8 = pnand %p2523_p6, %p2494_p7  ;;  %p2530_p0 = por %p2529_p11, %p2528_p9 }
  0x35   : > { %p2526_p10 = pneg %p2525_p8 }
  0x37   : > { %p2531_p2 = pnand %p2530_p0, %p2526_p10 }
  0x39   : > { %2534 = shalt.err (!%p2531_p2)
}
  0x3a   : > { %2306 = dma.hbm_to_vmem [thread:$0]  (!%p2773_p5), %s214_s10, 128, %s216_s6, %s204_s17  }
  0x3b   : > { %224 = sbr.rel (%p2723_p3) target bundleno = 3497 (0xda9), region = 32  ;;  %s2808_s12 = sand.u32 (!%p2723_p3), 1, %s2648_s16  }
  0x3c   : > { %s2811_s21 = sshll.u32 (!%p2723_p3), %s2808_s12, 3  ;;  %s227_s25 = scalar_lea.sflag (!%p2723_p3), [#allocation3], %s2808_s12 }
  0x3d   : > { %s230_s30 = scalar_lea.vmem (!%p2723_p3), [#allocation2], %s2811_s21 }
  0x40   : > { %2623 = dma.done.wait (%p2753_p12), %s227_s25, 128  }
  0x41   : > { %2625 = vsyncadd (%p2753_p12), %s227_s25, 4294967168  ;;  %s236_s17 = sand.u32 1, %s2718_s22   ;;  %s240_s6 = scalar_lea.vmem [#allocation5], %s2811_s21 }
  0x42   : > { %s237_s23 = scalar_lea.sflag [#allocation6], %s236_s17 }
  0x43   : > { %2627 = dma.done.wait (%p2753_p12), %s237_s23, 128  }
  0x44   : > { %2629 = vsyncadd (%p2753_p12), %s237_s23, 4294967168 }
  0x45   : > { %2631 = dma.done.wait (%p48_p1), [#allocation6], 8448  }
  0x46   : > { %2633 = vsyncadd (%p48_p1), [#allocation6], 4294958848  ;;  %v311_v0 = vld [vmem:[#allocation7 + $0x140] sm:$0xff]  ;;  %v286_v1 = vld [vmem:[#allocation7 + $0x18] sm:$0xff]  ;;  %s2661_s26 = smov 120   ;;  %vm287_vm0 = vcmask 261120  }
  0x47   : > { %v285_v2 = vld [vmem:[#allocation7 + $0x10] sm:$0xff]  ;;  %399 = vrot.lane.b32.xlu0 %v311_v0, %s2661_s26  ;;  %303 = vmatpush.msra.mxu0 %v286_v1  ;;  %v284_v3 = vld [vmem:[#allocation7 + $0x8] sm:$0xff]  ;;  %v283_v5 = vld [vmem:[#allocation7] sm:$0xff]  ;;  %vm319_vm1 = vcmask 64512   ;;  %s2662_s8 = smov 64   ;;  %s2665_s5 = smov 32  }
  0x48   : > { %v313_v4 = vld [vmem:[#allocation7 + $0x150] sm:$0xff]  ;;  %v315_v6 = vld [vmem:[#allocation7 + $0x160] sm:$0xff]  ;;  %v312_v8 = vld [vmem:[#allocation7 + $0x148] sm:$0xff]  ;;  %s2666_s28 = smov 96   ;;  %s2667_s10 = smov 16  }
  0x49   : > { %304 = vmatpush.msra.mxu0 %v285_v2  ;;  %403 = vrot.lane.b32.xlu1 %v313_v4, %s2661_s26  ;;  %v281_v7 = vld [vmem:[%s230_s30] sm:$0xff]  ;;  %v314_v9 = vld [vmem:[#allocation7 + $0x158] sm:$0xff]  ;;  %v317_v11 = vld [vmem:[#allocation7 + $0x170] sm:$0xff]  ;;  %s2668_s13 = smov 80   ;;  %s280_s7 = scalar_lea.vmem [#allocation9], %s2811_s21 }
  0x4a   : > { %407 = vrot.lane.b32.xlu2 %v315_v6, %s2661_s26  ;;  %v316_v10 = vld [vmem:[#allocation7 + $0x168] sm:$0xff]  ;;  %v318_v12 = vld [vmem:[#allocation7 + $0x178] sm:$0xff]  ;;  %v2853_v20 = vld [vmem:[#allocation7 + $0x130] sm:$0xff]  ;;  %s2032_s20 = sshll.u32 %s280_s7, 4  ;;  %s2248_s14 = sshll.u32 %s2718_s22, 3  ;;  %s2033_s20 = int_to_ptr.vmem [resolvable:$true] %s2032_s20 }
  0x4b   : > { %305 = vmatpush.msra.mxu0 %v284_v3  ;;  %v282_v13 = vld [vmem:[%s240_s6] sm:$0xff]  ;;  %v2857_v21 = vld [vmem:[#allocation7 + $0x128] sm:$0xff]  ;;  %v545_v26 = vld [vmem:[#allocation7 + $0x120] sm:$0xff]  ;;  %s2030_s27 = scalar_lea.hbm %s3501_s4, %s2248_s14  ;;  %s2006_s25 = scalar_lea.sflag [#allocation10], %s2808_s12 }
  0x4c   : > { %499 = vmatpush.msra.mxu3 %v282_v13  ;;  %v2851_v19 = vld [vmem:[#allocation7 + $0x138] sm:$0xff]  ;;  %v543_v28 = vld [vmem:[#allocation7 + $0x110] sm:$0xff]  ;;  %v542_v29 = vld [vmem:[#allocation7 + $0x108] sm:$0xff]  ;;  %s2034_s2 = sshll.u32 %s2030_s27, 4  ;;  %s2035_s2 = int_to_ptr.hbm [resolvable:$true] %s2034_s2 }
  0x4d   : > { %306 = vmatpush.msra.mxu0 %v283_v5  ;;  %v544_v27 = vld [vmem:[#allocation7 + $0x118] sm:$0xff]  ;;  %v541_v30 = vld [vmem:[#allocation7 + $0x100] sm:$0xff]  ;;  %v539_v32 = vld [vmem:[#allocation7 + $0xf0] sm:$0xff] }
  0x4e   : > { %2184 = vmatmul.msk.f32.vlgmr.msra.gmra.mxu0 %vm287_vm0, %v281_v7  ;;  %v540_v31 = vld [vmem:[#allocation7 + $0xf8] sm:$0xff]  ;;  %v538_v33 = vld [vmem:[#allocation7 + $0xe8] sm:$0xff]  ;;  %v537_v34 = vld [vmem:[#allocation7 + $0xe0] sm:$0xff] }
  0x4f   : > { %401 = vrot.lane.b32.xlu0 %v312_v8, %s2661_s26  ;;  %549 = vmatpush.msrb.mxu0 %v2851_v19  ;;  %v536_v35 = vld [vmem:[#allocation7 + $0xd8] sm:$0xff]  ;;  %v535_v36 = vld [vmem:[#allocation7 + $0xd0] sm:$0xff]  ;;  %v534_v37 = vld [vmem:[#allocation7 + $0xc8] sm:$0xff] }
  0x50   : > { %v533_v38 = vld [vmem:[#allocation7 + $0xc0] sm:$0xff]  ;;  %v477_v43 = vld [vmem:[#allocation7 + $0x188] sm:$0xff]  ;;  %v478_v46 = vld [vmem:[#allocation7 + $0x190] sm:$0xff] }
  0x51   : > { %405 = vrot.lane.b32.xlu1 %v314_v9, %s2661_s26  ;;  %550 = vmatpush.msrb.mxu0 %v2853_v20  ;;  %v476_v40 = vld [vmem:[#allocation7 + $0x180] sm:$0xff]  ;;  %v479_v49 = vld [vmem:[#allocation7 + $0x198] sm:$0xff]  ;;  %v481_v55 = vld [vmem:[#allocation7 + $0x1a8] sm:$0xff] }
  0x52   : > { %409 = vrot.lane.b32.xlu2 %v316_v10, %s2661_s26  ;;  %v480_v52 = vld [vmem:[#allocation7 + $0x1a0] sm:$0xff]  ;;  %v482_v58 = vld [vmem:[#allocation7 + $0x1b0] sm:$0xff]  ;;  %v483_v61 = vld [vmem:[#allocation7 + $0x1b8] sm:$0xff] }
  0x53   : > { %551 = vmatpush.msrb.mxu0 %v2857_v21 }
  0x55   : > { %552 = vmatpush.msrb.mxu0 %v545_v26 }
  0x57   : > { %411 = vrot.lane.b32.xlu0 %v317_v11, %s2661_s26  ;;  %553 = vmatpush.msrb.mxu0 %v544_v27 }
  0x59   : > { %413 = vrot.lane.b32.xlu1 %v318_v12, %s2661_s26  ;;  %554 = vmatpush.msrb.mxu0 %v543_v28  ;;  %s2570_s26 = scalar_lea.hbm %s3501_s4, 32 }
  0x5b   : > { %555 = vmatpush.msrb.mxu0 %v542_v29 }
  0x5d   : > { %556 = vmatpush.msrb.mxu0 %v541_v30 }
  0x5f   : > { %557 = vmatpush.msrb.mxu0 %v540_v31 }
  0x61   : > { %558 = vmatpush.msrb.mxu0 %v539_v32 }
  0x63   : > { %559 = vmatpush.msrb.mxu0 %v538_v33 }
  0x65   : > { %560 = vmatpush.msrb.mxu0 %v537_v34 }
  0x67   : > { %561 = vmatpush.msrb.mxu0 %v536_v35 }
  0x69   : > { %562 = vmatpush.msrb.mxu0 %v535_v36 }
  0x6b   : > { %563 = vmatpush.msrb.mxu0 %v534_v37 }
  0x6d   : > { %564 = vmatpush.msrb.mxu0 %v533_v38 }
  0xa4   : > { %v2859_v22 = vpop.permute.xlu2 %407 }
  0xac   : > { %v2869_v23 = vpop.permute.xlu2 %409 }
  0xb9   : > { %v2834_v14 = vpop.permute.xlu0 %399 }
  0xba   : > { %2201 = vmatmul.msk.f32.vlgmr.msra.gmra.mxu3 %vm319_vm1, %v2834_v14 }
  0xbb   : > { %v2842_v16 = vpop.permute.xlu1 %403 }
  0xc1   : > { %v2838_v15 = vpop.permute.xlu0 %401 }
  0xc2   : > { %2202 = vmatmul.msk.f32.gmra.mxu3 %vm319_vm1, %v2838_v15 }
  0xc3   : > { %v2847_v18 = vpop.permute.xlu1 %405 }
  0xc9   : > { %v2874_v24 = vpop.permute.xlu0 %411 }
  0xca   : > { %2203 = vmatmul.msk.f32.gmra.mxu3 %vm319_vm1, %v2842_v16 }
  0xcb   : > { %v308_v17 = vpop.f32.mrf.mxu0  ;;  %v2879_v25 = vpop.permute.xlu1 %413 }
  0xcc   : > { %416 = vrot.lane.b32.xlu2 %v308_v17, %s2662_s8  ;;  %359 = vmatpush.msra.mxu1 %v308_v17 }
  0xcd   : > { %2185 = vmatmul.msk.f32.vlgmr.msra.gmra.mxu1 %vm319_vm1, %v311_v0 }
  0xce   : > { %2252 = vmatpush.msrb.mxu1 %v2851_v19 }
  0xd0   : > { %2254 = vmatpush.msrb.mxu1 %v2853_v20 }
  0xd2   : > { %2204 = vmatmul.msk.f32.gmra.mxu3 %vm319_vm1, %v2847_v18  ;;  %2256 = vmatpush.msrb.mxu1 %v2857_v21 }
  0xd4   : > { %2258 = vmatpush.msrb.mxu1 %v545_v26 }
  0xd5   : > { %2186 = vmatmul.msk.f32.gmra.mxu1 %vm319_vm1, %v312_v8  ;;  %v2917_v8 = vld [vmem:[#allocation7 + $0x200] ss:$0 sm:$0xff] }
  0xd6   : > { %2260 = vmatpush.msrb.mxu1 %v544_v27 }
  0xd8   : > { %2262 = vmatpush.msrb.mxu1 %v543_v28 }
  0xda   : > { %2205 = vmatmul.msk.f32.gmra.mxu3 %vm319_vm1, %v2859_v22  ;;  %2264 = vmatpush.msrb.mxu1 %v542_v29 }
  0xdc   : > { %2266 = vmatpush.msrb.mxu1 %v541_v30 }
  0xdd   : > { %2187 = vmatmul.msk.f32.gmra.mxu1 %vm319_vm1, %v313_v4 }
  0xde   : > { %2268 = vmatpush.msrb.mxu1 %v540_v31 }
  0xe0   : > { %2270 = vmatpush.msrb.mxu1 %v539_v32 }
  0xe2   : > { %2206 = vmatmul.msk.f32.gmra.mxu3 %vm319_vm1, %v2869_v23  ;;  %2272 = vmatpush.msrb.mxu1 %v538_v33 }
  0xe4   : > { %2274 = vmatpush.msrb.mxu1 %v537_v34 }
  0xe5   : > { %2188 = vmatmul.msk.f32.gmra.mxu1 %vm319_vm1, %v314_v9 }
  0xe6   : > { %2276 = vmatpush.msrb.mxu1 %v536_v35 }
  0xe8   : > { %2278 = vmatpush.msrb.mxu1 %v535_v36 }
  0xea   : > { %2207 = vmatmul.msk.f32.gmra.mxu3 %vm319_vm1, %v2874_v24  ;;  %2280 = vmatpush.msrb.mxu1 %v534_v37 }
  0xec   : > { %2282 = vmatpush.msrb.mxu1 %v533_v38 }
  0xed   : > { %2189 = vmatmul.msk.f32.gmra.mxu1 %vm319_vm1, %v315_v6 }
  0xf2   : > { %2208 = vmatmul.msk.f32.gmra.mxu3 %vm319_vm1, %v2879_v25 }
  0xf5   : > { %2190 = vmatmul.msk.f32.gmra.mxu1 %vm319_vm1, %v316_v10 }
  0xfd   : > { %2191 = vmatmul.msk.f32.gmra.mxu1 %vm319_vm1, %v317_v11 }
 0x105   : > { %2192 = vmatmul.msk.f32.gmra.mxu1 %vm319_vm1, %v318_v12 }
 0x126   : > { %v417_v39 = vpop.permute.xlu2 %416 }
 0x127   : > { %450 = vmatpush.msra.mxu2 %v417_v39 }
 0x128   : > { %2193 = vmatmul.msk.f32.vlgmr.msra.gmra.mxu2 %vm319_vm1, %v2834_v14 }
 0x129   : > { %2253 = vmatpush.msrb.mxu2 %v2851_v19 }
 0x12b   : > { %2255 = vmatpush.msrb.mxu2 %v2853_v20 }
 0x12d   : > { %2257 = vmatpush.msrb.mxu2 %v2857_v21 }
 0x12f   : > { %2259 = vmatpush.msrb.mxu2 %v545_v26 }
 0x130   : > { %2194 = vmatmul.msk.f32.gmra.mxu2 %vm319_vm1, %v2838_v15 }
 0x131   : > { %2261 = vmatpush.msrb.mxu2 %v544_v27 }
 0x133   : > { %2263 = vmatpush.msrb.mxu2 %v543_v28 }
 0x135   : > { %2265 = vmatpush.msrb.mxu2 %v542_v29 }
 0x137   : > { %2267 = vmatpush.msrb.mxu2 %v541_v30 }
 0x138   : > { %2195 = vmatmul.msk.f32.gmra.mxu2 %vm319_vm1, %v2842_v16 }
 0x139   : > { %2269 = vmatpush.msrb.mxu2 %v540_v31 }
 0x13b   : > { %2271 = vmatpush.msrb.mxu2 %v539_v32 }
 0x13d   : > { %v501_v41 = vpop.f32.mrf.mxu3  ;;  %2273 = vmatpush.msrb.mxu2 %v538_v33 }
 0x13e   : > { %v525_v42 = vmul.f32 %v501_v41, %v476_v40 }
 0x13f   : > { %2275 = vmatpush.msrb.mxu2 %v537_v34 }
 0x140   : > { %2196 = vmatmul.msk.f32.gmra.mxu2 %vm319_vm1, %v2847_v18  ;;  %565 = vmatmul.f32.vlgmr.msrb.gmra.mxu0 %v525_v42 }
 0x141   : > { %2277 = vmatpush.msrb.mxu2 %v536_v35 }
 0x143   : > { %2279 = vmatpush.msrb.mxu2 %v535_v36 }
 0x145   : > { %v504_v44 = vpop.f32.mrf.mxu3  ;;  %2281 = vmatpush.msrb.mxu2 %v534_v37 }
 0x146   : > { %v526_v45 = vmul.f32 %v504_v44, %v477_v43 }
 0x147   : > { %2283 = vmatpush.msrb.mxu2 %v533_v38 }
 0x148   : > { %2197 = vmatmul.msk.f32.gmra.mxu2 %vm319_vm1, %v2859_v22  ;;  %568 = vmatmul.f32.gmra.mxu0 %v526_v45 }
 0x14a   : > { %v2905_v0 = vpop.f32.mrf.mxu1 }
 0x14d   : > { %v507_v47 = vpop.f32.mrf.mxu3 }
 0x14e   : > { %v527_v48 = vmul.f32 %v507_v47, %v478_v46 }
 0x150   : > { %2198 = vmatmul.msk.f32.gmra.mxu2 %vm319_vm1, %v2869_v23  ;;  %571 = vmatmul.f32.gmra.mxu0 %v527_v48 }
 0x152   : > { %v2907_v1 = vpop.f32.mrf.mxu1 }
 0x155   : > { %v510_v50 = vpop.f32.mrf.mxu3 }
 0x156   : > { %v528_v51 = vmul.f32 %v510_v50, %v479_v49 }
 0x158   : > { %2199 = vmatmul.msk.f32.gmra.mxu2 %vm319_vm1, %v2874_v24  ;;  %574 = vmatmul.f32.gmra.mxu0 %v528_v51  ;;  %v2663_v51 = vmov 32.0  }
 0x159   : > { %2377 = vrcp.f32 %v2663_v51 }
 0x15a   : > { %v2909_v2 = vpop.f32.mrf.mxu1 }
 0x15d   : > { %v513_v53 = vpop.f32.mrf.mxu3 }
 0x15e   : > { %v529_v54 = vmul.f32 %v513_v53, %v480_v52 }
 0x15f   : > { %v2378_v52 = vpop.eup %2377 }
 0x160   : > { %2200 = vmatmul.msk.f32.gmra.mxu2 %vm319_vm1, %v2879_v25  ;;  %577 = vmatmul.f32.gmra.mxu0 %v529_v54  ;;  %v643_v53 = vmul.f32 32.0, %v2378_v52  ;;  %vm647_vm2 = vweird.f32 %v2378_v52 }
 0x162   : > { %v2911_v4 = vpop.f32.mrf.mxu1  ;;  %v644_v54 = vsub.f32 1.0, %v643_v53  ;;  %v828_v53 = vld [vmem:[#allocation7 + $0x28] sm:$0xff] }
 0x165   : > { %v516_v56 = vpop.f32.mrf.mxu3 }
 0x166   : > { %v530_v57 = vmul.f32 %v516_v56, %v481_v55  ;;  %v645_v55 = vmul.f32 %v2378_v52, %v644_v54  ;;  %v827_v54 = vld [vmem:[#allocation7 + $0x20] sm:$0xff] }
 0x168   : > { %580 = vmatmul.f32.gmra.mxu0 %v530_v57  ;;  %v646_v57 = vadd.f32 %v2378_v52, %v645_v55 }
 0x16a   : > { %v2923_v13 = vpop.f32.mrf.mxu1 }
 0x16d   : > { %v519_v59 = vpop.f32.mrf.mxu3 }
 0x16e   : > { %v531_v60 = vmul.f32 %v519_v59, %v482_v58  ;;  %v2965_v58 = vsel %vm647_vm2, %v2378_v52, %v646_v57  ;;  %v830_v52 = vld [vmem:[#allocation7 + $0x38] sm:$0xff] }
 0x16f   : > { %867 = vmatpush.msra.mxu1 %v830_v52 }
 0x170   : > { %583 = vmatmul.f32.vlgmr.msrb.gmra.mxu1 %v531_v60 }
 0x172   : > { %v2933_v21 = vpop.f32.mrf.mxu1 }
 0x175   : > { %v522_v62 = vpop.f32.mrf.mxu3 }
 0x176   : > { %v532_v63 = vmul.f32 %v522_v62, %v483_v61 }
 0x178   : > { %586 = vmatmul.f32.vlgmr.msrb.gmra.mxu2 %v532_v63 }
 0x17a   : > { %v2941_v29 = vpop.f32.mrf.mxu1 }
 0x182   : > { %v2950_v37 = vpop.f32.mrf.mxu1 }
 0x1ab   : > { %v452_v3 = vpop.f32.mrf.mxu2 }
 0x1b3   : > { %v455_v5 = vpop.f32.mrf.mxu2 }
 0x1bb   : > { %v458_v15 = vpop.f32.mrf.mxu2 }
 0x1bd   : > { %v2913_v6 = vpop.f32.mrf.mxu0 }
 0x1be   : > { %v590_v7 = vadd.f32 %v2913_v6, %v2905_v0 }
 0x1c0   : > { %v598_v9 = vadd.f32 %v590_v7, %v452_v3 }
 0x1c2   : > { %v608_v10 = vadd.f32 %v2917_v8, %v598_v9 }
 0x1c3   : > { %v461_v23 = vpop.f32.mrf.mxu2 }
 0x1c4   : > { %v618_v11 = vsel %vm287_vm0, %v608_v10, 0.0 }
 0x1c5   : > { %v2921_v12 = vpop.f32.mrf.mxu0  ;;  %619 = vadd.xlane.f32.xlu0 %v618_v11 }
 0x1c6   : > { %v591_v14 = vadd.f32 %v2921_v12, %v2907_v1 }
 0x1c8   : > { %v599_v16 = vadd.f32 %v591_v14, %v455_v5 }
 0x1ca   : > { %v609_v17 = vadd.f32 %v2917_v8, %v599_v16 }
 0x1cb   : > { %v464_v31 = vpop.f32.mrf.mxu2 }
 0x1cc   : > { %v621_v18 = vsel %vm287_vm0, %v609_v17, 0.0 }
 0x1cd   : > { %v2929_v19 = vpop.f32.mrf.mxu0  ;;  %622 = vadd.xlane.f32.xlu1 %v621_v18 }
 0x1ce   : > { %v592_v20 = vadd.f32 %v2929_v19, %v2909_v2 }
 0x1d0   : > { %v600_v22 = vadd.f32 %v592_v20, %v458_v15 }
 0x1d2   : > { %v610_v24 = vadd.f32 %v2917_v8, %v600_v22 }
 0x1d3   : > { %v467_v39 = vpop.f32.mrf.mxu2 }
 0x1d4   : > { %v624_v25 = vsel %vm287_vm0, %v610_v24, 0.0 }
 0x1d5   : > { %v2937_v26 = vpop.f32.mrf.mxu0  ;;  %625 = vadd.xlane.f32.xlu2 %v624_v25 }
 0x1d6   : > { %v593_v27 = vadd.f32 %v2937_v26, %v2911_v4 }
 0x1d8   : > { %v601_v28 = vadd.f32 %v593_v27, %v461_v23 }
 0x1da   : > { %v611_v30 = vadd.f32 %v2917_v8, %v601_v28 }
 0x1db   : > { %v470_v47 = vpop.f32.mrf.mxu2 }
 0x1dc   : > { %v627_v32 = vsel %vm287_vm0, %v611_v30, 0.0 }
 0x1dd   : > { %v2945_v33 = vpop.f32.mrf.mxu0  ;;  %628 = vadd.xlane.f32.xlu2 %v627_v32 }
 0x1de   : > { %v594_v34 = vadd.f32 %v2945_v33, %v2923_v13 }
 0x1e0   : > { %v602_v35 = vadd.f32 %v594_v34, %v464_v31 }
 0x1e2   : > { %v612_v36 = vadd.f32 %v2917_v8, %v602_v35 }
 0x1e3   : > { %v473_v56 = vpop.f32.mrf.mxu2 }
 0x1e4   : > { %v630_v38 = vsel %vm287_vm0, %v612_v36, 0.0 }
 0x1e5   : > { %v2953_v40 = vpop.f32.mrf.mxu0  ;;  %631 = vadd.xlane.f32.xlu0 %v630_v38 }
 0x1e6   : > { %v595_v41 = vadd.f32 %v2953_v40, %v2933_v21 }
 0x1e8   : > { %v603_v42 = vadd.f32 %v595_v41, %v467_v39 }
 0x1ea   : > { %v613_v43 = vadd.f32 %v2917_v8, %v603_v42 }
 0x1ec   : > { %v633_v44 = vsel %vm287_vm0, %v613_v43, 0.0 }
 0x1ed   : > { %634 = vadd.xlane.f32.xlu1 %v633_v44  ;;  %v2959_v45 = vpop.f32.mrf.mxu1 }
 0x1ee   : > { %v596_v46 = vadd.f32 %v2959_v45, %v2941_v29 }
 0x1f0   : > { %v604_v48 = vadd.f32 %v596_v46, %v470_v47 }
 0x1f2   : > { %v614_v49 = vadd.f32 %v2917_v8, %v604_v48 }
 0x1f4   : > { %v636_v50 = vsel %vm287_vm0, %v614_v49, 0.0 }
 0x1f5   : > { %637 = vadd.xlane.f32.xlu0 %v636_v50 }
 0x1fb   : > { %v2967_v59 = vpop.f32.mrf.mxu2 }
 0x1fc   : > { %v597_v62 = vadd.f32 %v2967_v59, %v2950_v37 }
 0x1fe   : > { %v605_v5 = vadd.f32 %v597_v62, %v473_v56 }
 0x200   : > { %v615_v15 = vadd.f32 %v2917_v8, %v605_v5 }
 0x202   : > { %v639_v18 = vsel %vm287_vm0, %v615_v15, 0.0 }
 0x238   : > { %v620_v60 = vpop.xlane.xlu0 %619 }
 0x239   : > { %v649_v61 = vmul.f32 %v2965_v58, %v620_v60 }
 0x23b   : > { %v2972_v63 = vsub.f32 %v608_v10, %v649_v61 }
 0x23d   : > { %v665_v3 = vmul.f32 %v2972_v63, %v2972_v63 }
 0x23f   : > { %v673_v7 = vsel %vm287_vm0, %v665_v3, 0.0 }
 0x240   : > { %v623_v9 = vpop.xlane.xlu1 %622  ;;  %674 = vadd.xlane.f32.xlu2 %v673_v7 }
 0x241   : > { %v650_v11 = vmul.f32 %v2965_v58, %v623_v9 }
 0x243   : > { %v2978_v14 = vsub.f32 %v609_v17, %v650_v11 }
 0x245   : > { %v666_v16 = vmul.f32 %v2978_v14, %v2978_v14 }
 0x247   : > { %v676_v10 = vsel %vm287_vm0, %v666_v16, 0.0 }
 0x248   : > { %v626_v20 = vpop.xlane.xlu2 %625  ;;  %677 = vadd.xlane.f32.xlu1 %v676_v10  ;;  %640 = vadd.xlane.f32.xlu2 %v639_v18 }
 0x249   : > { %v651_v22 = vmul.f32 %v2965_v58, %v626_v20 }
 0x24b   : > { %v2986_v23 = vsub.f32 %v610_v24, %v651_v22 }
 0x24d   : > { %v667_v17 = vmul.f32 %v2986_v23, %v2986_v23 }
 0x24f   : > { %v679_v25 = vsel %vm287_vm0, %v667_v17, 0.0 }
 0x250   : > { %v629_v8 = vpop.xlane.xlu2 %628  ;;  %680 = vadd.xlane.f32.xlu0 %v679_v25 }
 0x251   : > { %v652_v27 = vmul.f32 %v2965_v58, %v629_v8 }
 0x253   : > { %v2992_v28 = vsub.f32 %v611_v30, %v652_v27 }
 0x255   : > { %v668_v31 = vmul.f32 %v2992_v28, %v2992_v28 }
 0x257   : > { %v682_v32 = vsel %vm287_vm0, %v668_v31, 0.0  ;;  %v3024_v31 = vld [vmem:[#allocation7 + $0x201] ss:$0 sm:$0xff] }
 0x258   : > { %v632_v34 = vpop.xlane.xlu0 %631  ;;  %683 = vadd.xlane.f32.xlu1 %v682_v32 }
 0x259   : > { %v653_v24 = vmul.f32 %v2965_v58, %v632_v34 }
 0x25b   : > { %v2998_v35 = vsub.f32 %v612_v36, %v653_v24 }
 0x25d   : > { %v669_v38 = vmul.f32 %v2998_v35, %v2998_v35 }
 0x25f   : > { %v685_v39 = vsel %vm287_vm0, %v669_v38, 0.0  ;;  %v3027_v38 = vld [vmem:[#allocation7 + $0x202] ss:$0 sm:$0xff] }
 0x260   : > { %v635_v41 = vpop.xlane.xlu1 %634  ;;  %686 = vadd.xlane.f32.xlu2 %v685_v39 }
 0x261   : > { %v654_v30 = vmul.f32 %v2965_v58, %v635_v41 }
 0x263   : > { %v3004_v42 = vsub.f32 %v613_v43, %v654_v30  ;;  %v829_v43 = vld [vmem:[#allocation7 + $0x30] sm:$0xff] }
 0x264   : > { %868 = vmatpush.msra.mxu1 %v829_v43 }
 0x265   : > { %v670_v44 = vmul.f32 %v3004_v42, %v3004_v42 }
 0x266   : > { %869 = vmatpush.msra.mxu1 %v828_v53 }
 0x267   : > { %v688_v46 = vsel %vm287_vm0, %v670_v44, 0.0 }
 0x268   : > { %689 = vadd.xlane.f32.xlu0 %v688_v46  ;;  %v638_v47 = vpop.xlane.xlu0 %637  ;;  %870 = vmatpush.msra.mxu1 %v827_v54 }
 0x269   : > { %v655_v36 = vmul.f32 %v2965_v58, %v638_v47 }
 0x26b   : > { %v3010_v48 = vsub.f32 %v614_v49, %v655_v36 }
 0x26d   : > { %v671_v50 = vmul.f32 %v3010_v48, %v3010_v48 }
 0x26f   : > { %v691_v51 = vsel %vm287_vm0, %v671_v50, 0.0 }
 0x270   : > { %692 = vadd.xlane.f32.xlu1 %v691_v51 }
 0x2b3   : > { %v675_v55 = vpop.xlane.xlu2 %674 }
 0x2b4   : > { %v697_v56 = vmul.f32 %v675_v55, %v2965_v58 }
 0x2b6   : > { %v705_v57 = vadd.f32 1e-05, %v697_v56 }
 0x2b8   : > { %2379 = vrsqrt.f32 %v705_v57  ;;  %vm719_vm4 = vweird.f32 %v705_v57 }
 0x2bb   : > { %v678_v49 = vpop.xlane.xlu1 %677  ;;  %v641_v60 = vpop.xlane.xlu2 %640 }
 0x2bc   : > { %v698_v61 = vmul.f32 %v678_v49, %v2965_v58  ;;  %v656_v62 = vmul.f32 %v2965_v58, %v641_v60 }
 0x2be   : > { %v2380_v3 = vpop.eup %2379  ;;  %v706_v5 = vadd.f32 1e-05, %v698_v61  ;;  %v3018_v7 = vsub.f32 %v615_v15, %v656_v62 }
 0x2bf   : > { %v714_v9 = vmul.f32 %v2380_v3, %v705_v57  ;;  %vm720_vm3 = vweird.f32 %v2380_v3 }
 0x2c0   : > { %2381 = vrsqrt.f32 %v706_v5  ;;  %v672_v11 = vmul.f32 %v3018_v7, %v3018_v7  ;;  %vm721_vm5 = vmor %vm719_vm4, %vm720_vm3  ;;  %vm729_vm7 = vweird.f32 %v706_v5 }
 0x2c1   : > { %v715_v16 = vmul.f32 %v2380_v3, %v714_v9 }
 0x2c2   : > { %v694_v10 = vsel %vm287_vm0, %v672_v11, 0.0 }
 0x2c3   : > { %v716_v18 = vmul.f32 0.5, %v715_v16  ;;  %695 = vadd.xlane.f32.xlu2 %v694_v10  ;;  %v681_v20 = vpop.xlane.xlu0 %680 }
 0x2c4   : > { %v699_v22 = vmul.f32 %v681_v20, %v2965_v58 }
 0x2c5   : > { %v717_v17 = vsub.f32 1.5, %v716_v18 }
 0x2c6   : > { %v2382_v25 = vpop.eup %2381  ;;  %v707_v8 = vadd.f32 1e-05, %v699_v22 }
 0x2c7   : > { %v718_v27 = vmul.f32 %v2380_v3, %v717_v17  ;;  %v724_v15 = vmul.f32 %v2382_v25, %v706_v5  ;;  %vm730_vm6 = vweird.f32 %v2382_v25 }
 0x2c8   : > { %2383 = vrsqrt.f32 %v707_v8  ;;  %vm731_vm8 = vmor %vm729_vm7, %vm730_vm6  ;;  %vm739_vm10 = vweird.f32 %v707_v8 }
 0x2c9   : > { %v722_v32 = vsel %vm721_vm5, %v2380_v3, %v718_v27  ;;  %v725_v34 = vmul.f32 %v2382_v25, %v724_v15 }
 0x2ca   : > { %v793_v24 = vmul.f32 %v722_v32, %v2972_v63 }
 0x2cb   : > { %v726_v39 = vmul.f32 0.5, %v725_v34  ;;  %v684_v41 = vpop.xlane.xlu1 %683 }
 0x2cc   : > { %v802_v30 = vmul.f32 %v3024_v31, %v793_v24  ;;  %v700_v44 = vmul.f32 %v684_v41, %v2965_v58 }
 0x2cd   : > { %v727_v46 = vsub.f32 1.5, %v726_v39 }
 0x2ce   : > { %v2384_v47 = vpop.eup %2383  ;;  %v708_v36 = vadd.f32 1e-05, %v700_v44  ;;  %v811_v50 = vadd.f32 %v3027_v38, %v802_v30 }
 0x2cf   : > { %v728_v51 = vmul.f32 %v2382_v25, %v727_v46  ;;  %v734_v52 = vmul.f32 %v2384_v47, %v707_v8  ;;  %vm740_vm9 = vweird.f32 %v2384_v47 }
 0x2d0   : > { %2385 = vrsqrt.f32 %v708_v36  ;;  %v819_v63 = vmax.f32 %v811_v50, 0.0  ;;  %vm741_vm11 = vmor %vm739_vm10, %vm740_vm9  ;;  %vm749_vm13 = vweird.f32 %v708_v36 }
 0x2d1   : > { %v732_v43 = vsel %vm731_vm8, %v2382_v25, %v728_v51  ;;  %v735_v53 = vmul.f32 %v2384_v47, %v734_v52 }
 0x2d2   : > { %2209 = vmatmul.msk.f32.vlgmr.msra.gmra.mxu1 %vm287_vm0, %v819_v63  ;;  %v794_v54 = vmul.f32 %v732_v43, %v2978_v14 }
 0x2d3   : > { %v736_v55 = vmul.f32 0.5, %v735_v53  ;;  %v687_v56 = vpop.xlane.xlu2 %686 }
 0x2d4   : > { %v701_v57 = vmul.f32 %v687_v56, %v2965_v58  ;;  %v803_v49 = vmul.f32 %v3024_v31, %v794_v54 }
 0x2d5   : > { %v737_v60 = vsub.f32 1.5, %v736_v55 }
 0x2d6   : > { %v2386_v61 = vpop.eup %2385  ;;  %v709_v62 = vadd.f32 1e-05, %v701_v57  ;;  %v812_v3 = vadd.f32 %v3027_v38, %v803_v49 }
 0x2d7   : > { %v738_v5 = vmul.f32 %v2384_v47, %v737_v60  ;;  %v744_v9 = vmul.f32 %v2386_v61, %v708_v36  ;;  %vm750_vm12 = vweird.f32 %v2386_v61 }
 0x2d8   : > { %2387 = vrsqrt.f32 %v709_v62  ;;  %v820_v11 = vmax.f32 %v812_v3, 0.0  ;;  %vm751_vm14 = vmor %vm749_vm13, %vm750_vm12  ;;  %vm759_vm1 = vweird.f32 %v709_v62  ;;  %vm908_vm12 = vcmask 130048  }
 0x2d9   : > { %v742_v16 = vsel %vm741_vm11, %v2384_v47, %v738_v5  ;;  %v745_v14 = vmul.f32 %v2386_v61, %v744_v9 }
 0x2da   : > { %2210 = vmatmul.msk.f32.gmra.mxu1 %vm287_vm0, %v820_v11  ;;  %v795_v10 = vmul.f32 %v742_v16, %v2986_v23 }
 0x2db   : > { %v746_v18 = vmul.f32 0.5, %v745_v14  ;;  %v690_v20 = vpop.xlane.xlu0 %689 }
 0x2dc   : > { %v702_v22 = vmul.f32 %v690_v20, %v2965_v58  ;;  %v804_v17 = vmul.f32 %v3024_v31, %v795_v10 }
 0x2dd   : > { %v747_v25 = vsub.f32 1.5, %v746_v18 }
 0x2de   : > { %v2388_v27 = vpop.eup %2387  ;;  %v710_v8 = vadd.f32 1e-05, %v702_v22  ;;  %v813_v15 = vadd.f32 %v3027_v38, %v804_v17 }
 0x2df   : > { %v748_v32 = vmul.f32 %v2386_v61, %v747_v25  ;;  %v754_v34 = vmul.f32 %v2388_v27, %v709_v62  ;;  %vm760_vm15 = vweird.f32 %v2388_v27 }
 0x2e0   : > { %2389 = vrsqrt.f32 %v710_v8  ;;  %v821_v24 = vmax.f32 %v813_v15, 0.0  ;;  %vm761_vm2 = vmor %vm759_vm1, %vm760_vm15  ;;  %vm769_vm4 = vweird.f32 %v710_v8 }
 0x2e1   : > { %v752_v39 = vsel %vm751_vm14, %v2386_v61, %v748_v32  ;;  %v755_v23 = vmul.f32 %v2388_v27, %v754_v34 }
 0x2e2   : > { %2211 = vmatmul.msk.f32.gmra.mxu1 %vm287_vm0, %v821_v24  ;;  %v796_v41 = vmul.f32 %v752_v39, %v2992_v28 }
 0x2e3   : > { %v756_v30 = vmul.f32 0.5, %v755_v23  ;;  %v693_v44 = vpop.xlane.xlu1 %692 }
 0x2e4   : > { %v703_v46 = vmul.f32 %v693_v44, %v2965_v58  ;;  %v805_v47 = vmul.f32 %v3024_v31, %v796_v41 }
 0x2e5   : > { %v757_v50 = vsub.f32 1.5, %v756_v30 }
 0x2e6   : > { %v2390_v51 = vpop.eup %2389  ;;  %v711_v36 = vadd.f32 1e-05, %v703_v46  ;;  %v814_v52 = vadd.f32 %v3027_v38, %v805_v47  ;;  %v2364_v46 = vld [vmem:[#allocation7 + $0x203] ss:$0 sm:$0xff] }
 0x2e7   : > { %v758_v63 = vmul.f32 %v2388_v27, %v757_v50  ;;  %v764_v43 = vmul.f32 %v2390_v51, %v710_v8  ;;  %vm770_vm3 = vweird.f32 %v2390_v51 }
 0x2e8   : > { %2391 = vrsqrt.f32 %v711_v36  ;;  %v822_v53 = vmax.f32 %v814_v52, 0.0  ;;  %vm771_vm5 = vmor %vm769_vm4, %vm770_vm3  ;;  %vm779_vm7 = vweird.f32 %v711_v36 }
 0x2e9   : > { %v762_v54 = vsel %vm761_vm2, %v2388_v27, %v758_v63  ;;  %v765_v28 = vmul.f32 %v2390_v51, %v764_v43 }
 0x2ea   : > { %2212 = vmatmul.msk.f32.gmra.mxu1 %vm287_vm0, %v822_v53  ;;  %v797_v55 = vmul.f32 %v762_v54, %v2998_v35 }
 0x2eb   : > { %v766_v56 = vmul.f32 0.5, %v765_v28 }
 0x2ec   : > { %v806_v57 = vmul.f32 %v3024_v31, %v797_v55 }
 0x2ed   : > { %v767_v49 = vsub.f32 1.5, %v766_v56 }
 0x2ee   : > { %v2392_v60 = vpop.eup %2391  ;;  %v815_v61 = vadd.f32 %v3027_v38, %v806_v57 }
 0x2ef   : > { %v768_v3 = vmul.f32 %v2390_v51, %v767_v49  ;;  %v774_v62 = vmul.f32 %v2392_v60, %v711_v36  ;;  %vm780_vm6 = vweird.f32 %v2392_v60 }
 0x2f0   : > { %v823_v5 = vmax.f32 %v815_v61, 0.0  ;;  %vm781_vm8 = vmor %vm779_vm7, %vm780_vm6 }
 0x2f1   : > { %v772_v9 = vsel %vm771_vm5, %v2390_v51, %v768_v3  ;;  %v775_v11 = vmul.f32 %v2392_v60, %v774_v62 }
 0x2f2   : > { %2213 = vmatmul.msk.f32.gmra.mxu1 %vm287_vm0, %v823_v5  ;;  %v798_v16 = vmul.f32 %v772_v9, %v3004_v42 }
 0x2f3   : > { %v776_v35 = vmul.f32 0.5, %v775_v11 }
 0x2f4   : > { %v807_v14 = vmul.f32 %v3024_v31, %v798_v16 }
 0x2f5   : > { %v777_v10 = vsub.f32 1.5, %v776_v35  ;;  %v2664_v35 = vmov 16.0  }
 0x2f6   : > { %v816_v18 = vadd.f32 %v3027_v38, %v807_v14 }
 0x2f7   : > { %v778_v20 = vmul.f32 %v2392_v60, %v777_v10 }
 0x2f8   : > { %v824_v22 = vmax.f32 %v816_v18, 0.0 }
 0x2f9   : > { %v782_v17 = vsel %vm781_vm8, %v2392_v60, %v778_v20 }
 0x2fa   : > { %2214 = vmatmul.msk.f32.gmra.mxu1 %vm287_vm0, %v824_v22  ;;  %v799_v25 = vmul.f32 %v782_v17, %v3010_v48 }
 0x2fc   : > { %v808_v27 = vmul.f32 %v3024_v31, %v799_v25 }
 0x2fe   : > { %v817_v42 = vadd.f32 %v3027_v38, %v808_v27 }
 0x300   : > { %v825_v8 = vmax.f32 %v817_v42, 0.0 }
 0x302   : > { %2215 = vmatmul.msk.f32.gmra.mxu1 %vm287_vm0, %v825_v8 }
 0x336   : > { %v696_v15 = vpop.xlane.xlu2 %695 }
 0x337   : > { %v704_v32 = vmul.f32 %v696_v15, %v2965_v58 }
 0x339   : > { %v712_v34 = vadd.f32 1e-05, %v704_v32 }
 0x33b   : > { %2393 = vrsqrt.f32 %v712_v34  ;;  %vm789_vm10 = vweird.f32 %v712_v34 }
 0x33c   : > { %2395 = vrcp.f32 %v2664_v35 }
 0x341   : > { %v2394_v24 = vpop.eup %2393 }
 0x342   : > { %v784_v39 = vmul.f32 %v2394_v24, %v712_v34  ;;  %vm790_vm9 = vweird.f32 %v2394_v24  ;;  %v2396_v14 = vpop.eup %2395 }
 0x343   : > { %vm791_vm11 = vmor %vm789_vm10, %vm790_vm9  ;;  %v934_v10 = vmul.f32 16.0, %v2396_v14  ;;  %vm938_vm13 = vweird.f32 %v2396_v14 }
 0x344   : > { %v785_v23 = vmul.f32 %v2394_v24, %v784_v39 }
 0x345   : > { %v935_v18 = vsub.f32 1.0, %v934_v10 }
 0x346   : > { %v786_v41 = vmul.f32 0.5, %v785_v23 }
 0x347   : > { %v936_v20 = vmul.f32 %v2396_v14, %v935_v18 }
 0x348   : > { %v787_v30 = vsub.f32 1.5, %v786_v41 }
 0x349   : > { %v937_v22 = vadd.f32 %v2396_v14, %v936_v20 }
 0x34a   : > { %v788_v44 = vmul.f32 %v2394_v24, %v787_v30 }
 0x34b   : > { %v3093_v17 = vsel %vm938_vm13, %v2396_v14, %v937_v22 }
 0x34c   : > { %v792_v48 = vsel %vm791_vm11, %v2394_v24, %v788_v44 }
 0x34d   : > { %v800_v47 = vmul.f32 %v792_v48, %v3018_v7 }
 0x34f   : > { %v3062_v50 = vpop.f32.mrf.mxu1  ;;  %v809_v51 = vmul.f32 %v3024_v31, %v800_v47 }
 0x350   : > { %v898_v36 = vadd.f32 %v2364_v46, %v3062_v50 }
 0x351   : > { %v818_v52 = vadd.f32 %v3027_v38, %v809_v51 }
 0x352   : > { %v909_v63 = vsel %vm908_vm12, %v898_v36, 0.0 }
 0x353   : > { %910 = vadd.xlane.f32.xlu0 %v909_v63  ;;  %v826_v43 = vmax.f32 %v818_v52, 0.0 }
 0x355   : > { %2216 = vmatmul.msk.f32.gmra.mxu1 %vm287_vm0, %v826_v43 }
 0x357   : > { %v3069_v53 = vpop.f32.mrf.mxu1 }
 0x358   : > { %v899_v54 = vadd.f32 %v2364_v46, %v3069_v53 }
 0x35a   : > { %v912_v7 = vsel %vm908_vm12, %v899_v54, 0.0 }
 0x35b   : > { %913 = vadd.xlane.f32.xlu1 %v912_v7 }
 0x35f   : > { %v3073_v28 = vpop.f32.mrf.mxu1 }
 0x360   : > { %v900_v31 = vadd.f32 %v2364_v46, %v3073_v28 }
 0x362   : > { %v915_v55 = vsel %vm908_vm12, %v900_v31, 0.0 }
 0x363   : > { %916 = vadd.xlane.f32.xlu2 %v915_v55 }
 0x367   : > { %v3077_v38 = vpop.f32.mrf.mxu1 }
 0x368   : > { %v901_v56 = vadd.f32 %v2364_v46, %v3077_v38 }
 0x36a   : > { %v918_v57 = vsel %vm908_vm12, %v901_v56, 0.0 }
 0x36b   : > { %919 = vadd.xlane.f32.xlu0 %v918_v57 }
 0x36f   : > { %v3081_v49 = vpop.f32.mrf.mxu1 }
 0x370   : > { %v902_v60 = vadd.f32 %v2364_v46, %v3081_v49 }
 0x372   : > { %v921_v61 = vsel %vm908_vm12, %v902_v60, 0.0 }
 0x373   : > { %922 = vadd.xlane.f32.xlu1 %v921_v61 }
 0x377   : > { %v3085_v3 = vpop.f32.mrf.mxu1 }
 0x378   : > { %v903_v62 = vadd.f32 %v2364_v46, %v3085_v3 }
 0x37a   : > { %v924_v5 = vsel %vm908_vm12, %v903_v62, 0.0 }
 0x37b   : > { %925 = vadd.xlane.f32.xlu2 %v924_v5 }
 0x37f   : > { %v3089_v9 = vpop.f32.mrf.mxu1 }
 0x380   : > { %v904_v11 = vadd.f32 %v2364_v46, %v3089_v9 }
 0x382   : > { %v927_v16 = vsel %vm908_vm12, %v904_v11, 0.0 }
 0x383   : > { %928 = vadd.xlane.f32.xlu1 %v927_v16 }
 0x3c6   : > { %v911_v25 = vpop.xlane.xlu0 %910 }
 0x3c7   : > { %v940_v27 = vmul.f32 %v3093_v17, %v911_v25 }
 0x3c9   : > { %v3096_v42 = vsub.f32 %v898_v36, %v940_v27 }
 0x3cb   : > { %v956_v8 = vmul.f32 %v3096_v42, %v3096_v42 }
 0x3cd   : > { %v964_v15 = vsel %vm908_vm12, %v956_v8, 0.0 }
 0x3ce   : > { %v914_v32 = vpop.xlane.xlu1 %913  ;;  %965 = vadd.xlane.f32.xlu0 %v964_v15 }
 0x3cf   : > { %v941_v34 = vmul.f32 %v3093_v17, %v914_v32 }
 0x3d1   : > { %v3102_v24 = vsub.f32 %v899_v54, %v941_v34 }
 0x3d2   : > { %v3104_v39 = vpop.f32.mrf.mxu1 }
 0x3d3   : > { %v957_v23 = vmul.f32 %v3102_v24, %v3102_v24  ;;  %v905_v41 = vadd.f32 %v2364_v46, %v3104_v39 }
 0x3d5   : > { %v967_v30 = vsel %vm908_vm12, %v957_v23, 0.0  ;;  %v930_v44 = vsel %vm908_vm12, %v905_v41, 0.0 }
 0x3d6   : > { %v917_v48 = vpop.xlane.xlu2 %916  ;;  %968 = vadd.xlane.f32.xlu2 %v967_v30  ;;  %931 = vadd.xlane.f32.xlu0 %v930_v44 }
 0x3d7   : > { %v942_v47 = vmul.f32 %v3093_v17, %v917_v48 }
 0x3d9   : > { %v3112_v51 = vsub.f32 %v900_v31, %v942_v47 }
 0x3db   : > { %v958_v36 = vmul.f32 %v3112_v51, %v3112_v51 }
 0x3dd   : > { %v970_v52 = vsel %vm908_vm12, %v958_v36, 0.0 }
 0x3de   : > { %971 = vadd.xlane.f32.xlu1 %v970_v52  ;;  %v920_v63 = vpop.xlane.xlu0 %919 }
 0x3df   : > { %v943_v46 = vmul.f32 %v3093_v17, %v920_v63 }
 0x3e1   : > { %v3118_v43 = vsub.f32 %v901_v56, %v943_v46 }
 0x3e3   : > { %v959_v54 = vmul.f32 %v3118_v43, %v3118_v43 }
 0x3e5   : > { %v973_v7 = vsel %vm908_vm12, %v959_v54, 0.0 }
 0x3e6   : > { %v923_v55 = vpop.xlane.xlu1 %922  ;;  %974 = vadd.xlane.f32.xlu2 %v973_v7 }
 0x3e7   : > { %v944_v31 = vmul.f32 %v3093_v17, %v923_v55 }
 0x3e9   : > { %v3124_v57 = vsub.f32 %v902_v60, %v944_v31 }
 0x3eb   : > { %v960_v61 = vmul.f32 %v3124_v57, %v3124_v57 }
 0x3ed   : > { %v976_v5 = vsel %vm908_vm12, %v960_v61, 0.0 }
 0x3ee   : > { %v926_v16 = vpop.xlane.xlu2 %925  ;;  %977 = vadd.xlane.f32.xlu0 %v976_v5  ;;  %v3150_v5 = vld [vmem:[#allocation7 + $0x204] ss:$0 sm:$0xff] }
 0x3ef   : > { %v945_v56 = vmul.f32 %v3093_v17, %v926_v16 }
 0x3f1   : > { %v3130_v35 = vsub.f32 %v903_v62, %v945_v56 }
 0x3f3   : > { %v961_v14 = vmul.f32 %v3130_v35, %v3130_v35 }
 0x3f5   : > { %v979_v10 = vsel %vm908_vm12, %v961_v14, 0.0 }
 0x3f6   : > { %980 = vadd.xlane.f32.xlu1 %v979_v10  ;;  %v929_v18 = vpop.xlane.xlu1 %928  ;;  %v3153_v10 = vld [vmem:[#allocation7 + $0x205] ss:$0 sm:$0xff] }
 0x3f7   : > { %v946_v60 = vmul.f32 %v3093_v17, %v929_v18 }
 0x3f9   : > { %v3136_v20 = vsub.f32 %v904_v11, %v946_v60 }
 0x3fb   : > { %v962_v22 = vmul.f32 %v3136_v20, %v3136_v20 }
 0x3fd   : > { %v982_v25 = vsel %vm908_vm12, %v962_v22, 0.0 }
 0x3fe   : > { %983 = vadd.xlane.f32.xlu2 %v982_v25 }
 0x441   : > { %v966_v27 = vpop.xlane.xlu0 %965 }
 0x442   : > { %v988_v62 = vmul.f32 %v966_v27, %v3093_v17 }
 0x444   : > { %v996_v8 = vadd.f32 1e-05, %v988_v62 }
 0x446   : > { %2397 = vrsqrt.f32 %v996_v8  ;;  %vm1010_vm15 = vweird.f32 %v996_v8 }
 0x449   : > { %v969_v15 = vpop.xlane.xlu2 %968  ;;  %v932_v32 = vpop.xlane.xlu0 %931 }
 0x44a   : > { %v989_v34 = vmul.f32 %v969_v15, %v3093_v17  ;;  %v947_v23 = vmul.f32 %v3093_v17, %v932_v32 }
 0x44c   : > { %v2398_v30 = vpop.eup %2397  ;;  %v997_v11 = vadd.f32 1e-05, %v989_v34  ;;  %v3144_v44 = vsub.f32 %v905_v41, %v947_v23 }
 0x44d   : > { %v1005_v48 = vmul.f32 %v2398_v30, %v996_v8  ;;  %vm1011_vm14 = vweird.f32 %v2398_v30 }
 0x44e   : > { %2399 = vrsqrt.f32 %v997_v11  ;;  %v963_v47 = vmul.f32 %v3144_v44, %v3144_v44  ;;  %vm1012_vm1 = vmor %vm1010_vm15, %vm1011_vm14  ;;  %vm1020_vm3 = vweird.f32 %v997_v11 }
 0x44f   : > { %v1006_v36 = vmul.f32 %v2398_v30, %v1005_v48 }
 0x450   : > { %v985_v52 = vsel %vm908_vm12, %v963_v47, 0.0 }
 0x451   : > { %v1007_v63 = vmul.f32 0.5, %v1006_v36  ;;  %v972_v46 = vpop.xlane.xlu1 %971  ;;  %986 = vadd.xlane.f32.xlu0 %v985_v52 }
 0x452   : > { %v990_v54 = vmul.f32 %v972_v46, %v3093_v17 }
 0x453   : > { %v1008_v7 = vsub.f32 1.5, %v1007_v63 }
 0x454   : > { %v2400_v55 = vpop.eup %2399  ;;  %v998_v31 = vadd.f32 1e-05, %v990_v54 }
 0x455   : > { %v1009_v61 = vmul.f32 %v2398_v30, %v1008_v7  ;;  %v1015_v41 = vmul.f32 %v2400_v55, %v997_v11  ;;  %vm1021_vm2 = vweird.f32 %v2400_v55 }
 0x456   : > { %2401 = vrsqrt.f32 %v998_v31  ;;  %vm1022_vm4 = vmor %vm1020_vm3, %vm1021_vm2  ;;  %vm1030_vm6 = vweird.f32 %v998_v31 }
 0x457   : > { %v1013_v16 = vsel %vm1012_vm1, %v2398_v30, %v1009_v61  ;;  %v1016_v56 = vmul.f32 %v2400_v55, %v1015_v41 }
 0x458   : > { %v1084_v14 = vmul.f32 %v1013_v16, %v3096_v42 }
 0x459   : > { %v1017_v18 = vmul.f32 0.5, %v1016_v56  ;;  %v975_v60 = vpop.xlane.xlu2 %974 }
 0x45a   : > { %v991_v22 = vmul.f32 %v975_v60, %v3093_v17  ;;  %v1093_v25 = vmul.f32 %v3150_v5, %v1084_v14 }
 0x45b   : > { %v1018_v27 = vsub.f32 1.5, %v1017_v18 }
 0x45c   : > { %v2402_v62 = vpop.eup %2401  ;;  %v999_v8 = vadd.f32 1e-05, %v991_v22  ;;  %v1102_v15 = vadd.f32 %v3153_v10, %v1093_v25 }
 0x45d   : > { %v1019_v32 = vmul.f32 %v2400_v55, %v1018_v27  ;;  %v1025_v34 = vmul.f32 %v2402_v62, %v998_v31  ;;  %vm1031_vm5 = vweird.f32 %v2402_v62 }
 0x45e   : > { %2403 = vrsqrt.f32 %v999_v8  ;;  %v1110_v42 = vmax.f32 %v1102_v15, 0.0  ;;  %vm1032_vm7 = vmor %vm1030_vm6, %vm1031_vm5  ;;  %vm1040_vm9 = vweird.f32 %v999_v8 }
 0x45f   : > { %v1023_v23 = vsel %vm1022_vm4, %v2400_v55, %v1019_v32  ;;  %v1026_v30 = vmul.f32 %v2402_v62, %v1025_v34 }
 0x460   : > { %1126 = vrot.lane.b32.xlu1 %v1110_v42, %s2665_s5  ;;  %v1085_v48 = vmul.f32 %v1023_v23, %v3102_v24 }
 0x461   : > { %v1027_v47 = vmul.f32 0.5, %v1026_v30  ;;  %v978_v36 = vpop.xlane.xlu0 %977 }
 0x462   : > { %v992_v52 = vmul.f32 %v978_v36, %v3093_v17  ;;  %v1094_v63 = vmul.f32 %v3150_v5, %v1085_v48 }
 0x463   : > { %v1028_v46 = vsub.f32 1.5, %v1027_v47 }
 0x464   : > { %v2404_v11 = vpop.eup %2403  ;;  %v1000_v54 = vadd.f32 1e-05, %v992_v52  ;;  %v1103_v7 = vadd.f32 %v3153_v10, %v1094_v63 }
 0x465   : > { %v1029_v61 = vmul.f32 %v2402_v62, %v1028_v46  ;;  %v1035_v55 = vmul.f32 %v2404_v11, %v999_v8  ;;  %vm1041_vm8 = vweird.f32 %v2404_v11 }
 0x466   : > { %2405 = vrsqrt.f32 %v1000_v54  ;;  %v1111_v41 = vmax.f32 %v1103_v7, 0.0  ;;  %vm1042_vm10 = vmor %vm1040_vm9, %vm1041_vm8  ;;  %vm1050_vm13 = vweird.f32 %v1000_v54 }
 0x467   : > { %v1033_v16 = vsel %vm1032_vm7, %v2402_v62, %v1029_v61  ;;  %v1036_v24 = vmul.f32 %v2404_v11, %v1035_v55 }
 0x468   : > { %1128 = vrot.lane.b32.xlu2 %v1111_v41, %s2665_s5  ;;  %v1086_v56 = vmul.f32 %v1033_v16, %v3112_v51 }
 0x469   : > { %v1037_v14 = vmul.f32 0.5, %v1036_v24  ;;  %v981_v18 = vpop.xlane.xlu1 %980 }
 0x46a   : > { %v993_v60 = vmul.f32 %v981_v18, %v3093_v17  ;;  %v1095_v22 = vmul.f32 %v3150_v5, %v1086_v56 }
 0x46b   : > { %v1038_v25 = vsub.f32 1.5, %v1037_v14 }
 0x46c   : > { %v2406_v27 = vpop.eup %2405  ;;  %v1001_v31 = vadd.f32 1e-05, %v993_v60  ;;  %v1104_v15 = vadd.f32 %v3153_v10, %v1095_v22 }
 0x46d   : > { %v1039_v32 = vmul.f32 %v2404_v11, %v1038_v25  ;;  %v1045_v62 = vmul.f32 %v2406_v27, %v1000_v54  ;;  %vm1051_vm11 = vweird.f32 %v2406_v27 }
 0x46e   : > { %2407 = vrsqrt.f32 %v1001_v31  ;;  %v1112_v34 = vmax.f32 %v1104_v15, 0.0  ;;  %vm1052_vm14 = vmor %vm1050_vm13, %vm1051_vm11  ;;  %vm1060_vm1 = vweird.f32 %v1001_v31 }
 0x46f   : > { %v1043_v42 = vsel %vm1042_vm10, %v2404_v11, %v1039_v32  ;;  %v1046_v51 = vmul.f32 %v2406_v27, %v1045_v62 }
 0x470   : > { %1130 = vrot.lane.b32.xlu0 %v1112_v34, %s2665_s5  ;;  %v1087_v23 = vmul.f32 %v1043_v42, %v3118_v43 }
 0x471   : > { %v1047_v30 = vmul.f32 0.5, %v1046_v51  ;;  %v984_v48 = vpop.xlane.xlu2 %983 }
 0x472   : > { %v994_v47 = vmul.f32 %v984_v48, %v3093_v17  ;;  %v1096_v36 = vmul.f32 %v3150_v5, %v1087_v23 }
 0x473   : > { %v1048_v52 = vsub.f32 1.5, %v1047_v30 }
 0x474   : > { %v2408_v63 = vpop.eup %2407  ;;  %v1002_v8 = vadd.f32 1e-05, %v994_v47  ;;  %v1105_v46 = vadd.f32 %v3153_v10, %v1096_v36 }
 0x475   : > { %v1049_v7 = vmul.f32 %v2406_v27, %v1048_v52  ;;  %v1055_v11 = vmul.f32 %v2408_v63, %v1001_v31  ;;  %vm1061_vm15 = vweird.f32 %v2408_v63 }
 0x476   : > { %2409 = vrsqrt.f32 %v1002_v8  ;;  %v1113_v61 = vmax.f32 %v1105_v46, 0.0  ;;  %vm1062_vm2 = vmor %vm1060_vm1, %vm1061_vm15  ;;  %vm1070_vm4 = vweird.f32 %v1002_v8 }
 0x477   : > { %v1053_v55 = vsel %vm1052_vm14, %v2406_v27, %v1049_v7  ;;  %v1056_v43 = vmul.f32 %v2408_v63, %v1055_v11 }
 0x478   : > { %1132 = vrot.lane.b32.xlu1 %v1113_v61, %s2665_s5  ;;  %v1088_v41 = vmul.f32 %v1053_v55, %v3124_v57 }
 0x479   : > { %v1057_v16 = vmul.f32 0.5, %v1056_v43 }
 0x47a   : > { %v1097_v24 = vmul.f32 %v3150_v5, %v1088_v41 }
 0x47b   : > { %v1058_v56 = vsub.f32 1.5, %v1057_v16 }
 0x47c   : > { %v2410_v14 = vpop.eup %2409  ;;  %v1106_v18 = vadd.f32 %v3153_v10, %v1097_v24 }
 0x47d   : > { %v1059_v60 = vmul.f32 %v2408_v63, %v1058_v56  ;;  %v1065_v54 = vmul.f32 %v2410_v14, %v1002_v8  ;;  %vm1071_vm3 = vweird.f32 %v2410_v14 }
 0x47e   : > { %v1114_v22 = vmax.f32 %v1106_v18, 0.0  ;;  %vm1072_vm5 = vmor %vm1070_vm4, %vm1071_vm3 }
 0x47f   : > { %v1063_v25 = vsel %vm1062_vm2, %v2408_v63, %v1059_v60  ;;  %v1066_v27 = vmul.f32 %v2410_v14, %v1065_v54 }
 0x480   : > { %1134 = vrot.lane.b32.xlu0 %v1114_v22, %s2665_s5  ;;  %v1089_v15 = vmul.f32 %v1063_v25, %v3130_v35 }
 0x481   : > { %v1067_v57 = vmul.f32 0.5, %v1066_v27 }
 0x482   : > { %v1098_v32 = vmul.f32 %v3150_v5, %v1089_v15 }
 0x483   : > { %v1068_v62 = vsub.f32 1.5, %v1067_v57 }
 0x484   : > { %v1107_v34 = vadd.f32 %v3153_v10, %v1098_v32 }
 0x485   : > { %v1069_v42 = vmul.f32 %v2410_v14, %v1068_v62 }
 0x486   : > { %v1115_v31 = vmax.f32 %v1107_v34, 0.0 }
 0x487   : > { %v1073_v51 = vsel %vm1072_vm5, %v2410_v14, %v1069_v42 }
 0x488   : > { %1136 = vrot.lane.b32.xlu2 %v1115_v31, %s2665_s5  ;;  %v1090_v23 = vmul.f32 %v1073_v51, %v3136_v20 }
 0x48a   : > { %v1099_v30 = vmul.f32 %v3150_v5, %v1090_v23 }
 0x48c   : > { %v1108_v35 = vadd.f32 %v3153_v10, %v1099_v30 }
 0x48e   : > { %v1116_v48 = vmax.f32 %v1108_v35, 0.0 }
 0x490   : > { %1138 = vrot.lane.b32.xlu0 %v1116_v48, %s2665_s5 }
 0x4c2   : > { %v1129_v47 = vpop.permute.xlu2 %1128 }
 0x4c3   : > { %v3187_v36 = vadd.f32 %v1129_v47, %v2921_v12 }
 0x4c4   : > { %v987_v52 = vpop.xlane.xlu0 %986 }
 0x4c5   : > { %v995_v63 = vmul.f32 %v987_v52, %v3093_v17  ;;  %1170 = vrot.lane.b32.xlu2 %v3187_v36, %s2666_s28 }
 0x4c7   : > { %v1003_v8 = vadd.f32 1e-05, %v995_v63 }
 0x4c9   : > { %2411 = vrsqrt.f32 %v1003_v8  ;;  %vm1080_vm7 = vweird.f32 %v1003_v8 }
 0x4cf   : > { %v2412_v20 = vpop.eup %2411 }
 0x4d0   : > { %v1075_v46 = vmul.f32 %v2412_v20, %v1003_v8  ;;  %vm1081_vm6 = vweird.f32 %v2412_v20 }
 0x4d1   : > { %vm1082_vm8 = vmor %vm1080_vm7, %vm1081_vm6 }
 0x4d2   : > { %v1076_v7 = vmul.f32 %v2412_v20, %v1075_v46  ;;  %v1127_v56 = vpop.permute.xlu1 %1126 }
 0x4d3   : > { %v1150_v54 = vadd.f32 %v1127_v56, %v2913_v6 }
 0x4d4   : > { %v1077_v11 = vmul.f32 0.5, %v1076_v7 }
 0x4d6   : > { %v1078_v61 = vsub.f32 1.5, %v1077_v11 }
 0x4d8   : > { %v1079_v55 = vmul.f32 %v2412_v20, %v1078_v61 }
 0x4da   : > { %v1083_v12 = vsel %vm1082_vm8, %v2412_v20, %v1079_v55 }
 0x4db   : > { %v1091_v43 = vmul.f32 %v1083_v12, %v3144_v44 }
 0x4dd   : > { %v1100_v41 = vmul.f32 %v3150_v5, %v1091_v43 }
 0x4df   : > { %v1109_v16 = vadd.f32 %v3153_v10, %v1100_v41 }
 0x4e1   : > { %v1117_v24 = vmax.f32 %v1109_v16, 0.0 }
 0x4e2   : > { %v1131_v14 = vpop.permute.xlu0 %1130  ;;  %v1137_v60 = vpop.permute.xlu2 %1136 }
 0x4e3   : > { %v3196_v18 = vadd.f32 %v1131_v14, %v2929_v19  ;;  %1140 = vrot.lane.b32.xlu1 %v1117_v24, %s2665_s5  ;;  %v1155_v44 = vadd.f32 %v1137_v60, %v2953_v40 }
 0x4e5   : > { %1172 = vrot.lane.b32.xlu0 %v3196_v18, %s2666_s28 }
 0x4ea   : > { %v1133_v22 = vpop.permute.xlu1 %1132 }
 0x4eb   : > { %v1153_v5 = vadd.f32 %v1133_v22, %v2937_v26  ;;  %1168 = vrot.lane.b32.xlu1 %v1150_v54, %s2666_s28 }
 0x4ed   : > { %1174 = vrot.lane.b32.xlu2 %v1153_v5, %s2666_s28  ;;  %1178 = vrot.lane.b32.xlu0 %v1155_v44, %s2666_s28 }
 0x4f2   : > { %v1135_v19 = vpop.permute.xlu0 %1134 }
 0x4f3   : > { %v1154_v10 = vadd.f32 %v1135_v19, %v2945_v33 }
 0x4f5   : > { %1176 = vrot.lane.b32.xlu1 %v1154_v10, %s2666_s28 }
 0x502   : > { %v1139_v25 = vpop.permute.xlu0 %1138 }
 0x503   : > { %v1156_v27 = vadd.f32 %v1139_v25, %v2959_v45 }
 0x505   : > { %1180 = vrot.lane.b32.xlu1 %v1156_v27, %s2666_s28 }
 0x51f   : > { %v1171_v6 = vpop.permute.xlu2 %1170 }
 0x520   : > { %v1195_v40 = vsel %vm908_vm12, %v1171_v6, 0.0 }
 0x521   : > { %1196 = vadd.xlane.f32.xlu0 %v1195_v40 }
 0x547   : > { %v1175_v62 = vpop.permute.xlu2 %1174 }
 0x548   : > { %v1201_v45 = vsel %vm908_vm12, %v1175_v62, 0.0 }
 0x555   : > { %v1141_v26 = vpop.permute.xlu1 %1140 }
 0x556   : > { %v3213_v15 = vadd.f32 %v1141_v26, %v2967_v59 }
 0x557   : > { %v1173_v32 = vpop.permute.xlu0 %1172 }
 0x558   : > { %1182 = vrot.lane.b32.xlu1 %v3213_v15, %s2666_s28  ;;  %v1198_v30 = vsel %vm908_vm12, %v1173_v32, 0.0 }
 0x55d   : > { %v1169_v57 = vpop.permute.xlu1 %1168 }
 0x55e   : > { %v1192_v33 = vsel %vm908_vm12, %v1169_v57, 0.0  ;;  %v2367_v57 = vld [vmem:[#allocation7 + $0x206] ss:$0 sm:$0xff] }
 0x55f   : > { %1193 = vadd.xlane.f32.xlu2 %v1192_v33  ;;  %v1179_v31 = vpop.permute.xlu0 %1178 }
 0x560   : > { %v1207_v59 = vsel %vm908_vm12, %v1179_v31, 0.0 }
 0x567   : > { %1202 = vadd.xlane.f32.xlu2 %v1201_v45  ;;  %v1177_v34 = vpop.permute.xlu1 %1176 }
 0x568   : > { %v1204_v42 = vsel %vm908_vm12, %v1177_v34, 0.0 }
 0x569   : > { %1205 = vadd.xlane.f32.xlu0 %v1204_v42 }
 0x56f   : > { %1208 = vadd.xlane.f32.xlu2 %v1207_v59  ;;  %v2368_v59 = vld [vmem:[#allocation7 + $0x207] ss:$0 sm:$0xff] }
 0x577   : > { %v1181_v51 = vpop.permute.xlu1 %1180 }
 0x578   : > { %v1210_v23 = vsel %vm908_vm12, %v1181_v51, 0.0 }
 0x579   : > { %1211 = vadd.xlane.f32.xlu2 %v1210_v23 }
 0x582   : > { %1199 = vadd.xlane.f32.xlu1 %v1198_v30 }
 0x594   : > { %v1197_v35 = vpop.xlane.xlu0 %1196 }
 0x595   : > { %v1217_v48 = vmul.f32 %v1197_v35, %v3093_v17 }
 0x597   : > { %v3225_v47 = vsub.f32 %v3187_v36, %v1217_v48 }
 0x599   : > { %v1233_v52 = vmul.f32 %v3225_v47, %v3225_v47 }
 0x59b   : > { %1250 = vrot.lane.b32.xlu1 %v1233_v52, %s2666_s28 }
 0x5ca   : > { %v1183_v63 = vpop.permute.xlu1 %1182 }
 0x5cb   : > { %v1213_v8 = vsel %vm908_vm12, %v1183_v63, 0.0 }
 0x5cc   : > { %1214 = vadd.xlane.f32.xlu2 %v1213_v8 }
 0x5d2   : > { %v1194_v20 = vpop.xlane.xlu2 %1193 }
 0x5d3   : > { %v1216_v46 = vmul.f32 %v1194_v20, %v3093_v17 }
 0x5d5   : > { %v3232_v7 = vsub.f32 %v1150_v54, %v1216_v46 }
 0x5d7   : > { %v1232_v11 = vmul.f32 %v3232_v7, %v3232_v7 }
 0x5d9   : > { %1248 = vrot.lane.b32.xlu0 %v1232_v11, %s2666_s28 }
 0x5da   : > { %v1203_v36 = vpop.xlane.xlu2 %1202 }
 0x5db   : > { %v1219_v61 = vmul.f32 %v1203_v36, %v3093_v17 }
 0x5dc   : > { %v1206_v55 = vpop.xlane.xlu0 %1205 }
 0x5dd   : > { %v3238_v12 = vsub.f32 %v1153_v5, %v1219_v61  ;;  %v1220_v43 = vmul.f32 %v1206_v55, %v3093_v17 }
 0x5df   : > { %v1235_v41 = vmul.f32 %v3238_v12, %v3238_v12  ;;  %v3244_v24 = vsub.f32 %v1154_v10, %v1220_v43 }
 0x5e1   : > { %1254 = vrot.lane.b32.xlu0 %v1235_v41, %s2666_s28  ;;  %v1236_v54 = vmul.f32 %v3244_v24, %v3244_v24 }
 0x5e2   : > { %v1209_v16 = vpop.xlane.xlu2 %1208 }
 0x5e3   : > { %v1221_v56 = vmul.f32 %v1209_v16, %v3093_v17 }
 0x5e5   : > { %v3247_v14 = vsub.f32 %v1155_v44, %v1221_v56 }
 0x5e7   : > { %v1237_v60 = vmul.f32 %v3247_v14, %v3247_v14 }
 0x5e9   : > { %1258 = vrot.lane.b32.xlu1 %v1237_v60, %s2666_s28  ;;  %1256 = vrot.lane.b32.xlu0 %v1236_v54, %s2666_s28 }
 0x5ec   : > { %v1212_v22 = vpop.xlane.xlu2 %1211 }
 0x5ed   : > { %v1222_v5 = vmul.f32 %v1212_v22, %v3093_v17 }
 0x5ef   : > { %v3256_v19 = vsub.f32 %v1156_v27, %v1222_v5 }
 0x5f1   : > { %v1238_v10 = vmul.f32 %v3256_v19, %v3256_v19 }
 0x5f3   : > { %1260 = vrot.lane.b32.xlu1 %v1238_v10, %s2666_s28 }
 0x5f5   : > { %v1200_v44 = vpop.xlane.xlu1 %1199 }
 0x5f6   : > { %v1218_v25 = vmul.f32 %v1200_v44, %v3093_v17 }
 0x5f8   : > { %v3263_v6 = vsub.f32 %v3196_v18, %v1218_v25 }
 0x5fa   : > { %v1234_v40 = vmul.f32 %v3263_v6, %v3263_v6 }
 0x5fc   : > { %1252 = vrot.lane.b32.xlu2 %v1234_v40, %s2666_s28 }
 0x60d   : > { %v1251_v26 = vpop.permute.xlu1 %1250 }
 0x60e   : > { %v1275_v27 = vsel %vm908_vm12, %v1251_v26, 0.0 }
 0x625   : > { %1276 = vadd.xlane.f32.xlu2 %v1275_v27 }
 0x63d   : > { %1402 = vrot.lane.b32.xlu2 %v2367_v57, %s2665_s5 }
 0x63f   : > { %v1215_v33 = vpop.xlane.xlu2 %1214 }
 0x640   : > { %v1223_v32 = vmul.f32 %v1215_v33, %v3093_v17 }
 0x642   : > { %v3272_v62 = vsub.f32 %v3213_v15, %v1223_v32 }
 0x644   : > { %v1239_v18 = vmul.f32 %v3272_v62, %v3272_v62 }
 0x646   : > { %1262 = vrot.lane.b32.xlu1 %v1239_v18, %s2666_s28 }
 0x64b   : > { %v1249_v45 = vpop.permute.xlu0 %1248 }
 0x64c   : > { %v1272_v34 = vsel %vm908_vm12, %v1249_v45, 0.0 }
 0x64d   : > { %1273 = vadd.xlane.f32.xlu0 %v1272_v34 }
 0x653   : > { %v1255_v42 = vpop.permute.xlu0 %1254 }
 0x654   : > { %v1281_v31 = vsel %vm908_vm12, %v1255_v42, 0.0 }
 0x655   : > { %1282 = vadd.xlane.f32.xlu0 %v1281_v31 }
 0x656   : > { %v1253_v51 = vpop.permute.xlu2 %1252 }
 0x657   : > { %v1278_v15 = vsel %vm908_vm12, %v1253_v51, 0.0 }
 0x65b   : > { %v1257_v23 = vpop.permute.xlu0 %1256  ;;  %v1259_v35 = vpop.permute.xlu1 %1258 }
 0x65c   : > { %v1284_v30 = vsel %vm908_vm12, %v1257_v23, 0.0  ;;  %v1287_v48 = vsel %vm908_vm12, %v1259_v35, 0.0 }
 0x665   : > { %v1261_v52 = vpop.permute.xlu1 %1260 }
 0x666   : > { %v1290_v63 = vsel %vm908_vm12, %v1261_v52, 0.0 }
 0x669   : > { %1415 = vrot.lane.b32.xlu0 %v2368_v59, %s2665_s5 }
 0x670   : > { %1279 = vadd.xlane.f32.xlu1 %v1278_v15 }
 0x678   : > { %1285 = vadd.xlane.f32.xlu1 %v1284_v30 }
 0x680   : > { %1288 = vadd.xlane.f32.xlu1 %v1287_v48 }
 0x693   : > { %1291 = vadd.xlane.f32.xlu0 %v1290_v63 }
 0x698   : > { %v1277_v8 = vpop.xlane.xlu2 %1276 }
 0x699   : > { %v1297_v20 = vmul.f32 %v1277_v8, %v3093_v17 }
 0x69b   : > { %v1305_v36 = vadd.f32 1e-05, %v1297_v20 }
 0x69d   : > { %2413 = vrsqrt.f32 %v1305_v36  ;;  %vm1328_vm14 = vweird.f32 %v1305_v36 }
 0x6a0   : > { %v3289_v31 = vpop.permute.xlu2 %1402 }
 0x6a3   : > { %v2414_v41 = vpop.eup %2413 }
 0x6a4   : > { %v1323_v16 = vmul.f32 %v2414_v41, %v1305_v36  ;;  %vm1329_vm13 = vweird.f32 %v2414_v41 }
 0x6a5   : > { %vm1330_vm15 = vmor %vm1328_vm14, %vm1329_vm13 }
 0x6a6   : > { %v1324_v22 = vmul.f32 %v2414_v41, %v1323_v16 }
 0x6a8   : > { %v1325_v25 = vmul.f32 0.5, %v1324_v22 }
 0x6aa   : > { %v1326_v57 = vsub.f32 1.5, %v1325_v25 }
 0x6ac   : > { %v1327_v34 = vmul.f32 %v2414_v41, %v1326_v57 }
 0x6ae   : > { %v1331_v23 = vsel %vm1330_vm15, %v2414_v41, %v1327_v34 }
 0x6b8   : > { %v1263_v46 = vpop.permute.xlu1 %1262 }
 0x6b9   : > { %v1293_v11 = vsel %vm908_vm12, %v1263_v46, 0.0 }
 0x6ba   : > { %1294 = vadd.xlane.f32.xlu2 %v1293_v11 }
 0x6c0   : > { %v1274_v61 = vpop.xlane.xlu0 %1273 }
 0x6c1   : > { %v1296_v55 = vmul.f32 %v1274_v61, %v3093_v17 }
 0x6c3   : > { %v1304_v43 = vadd.f32 1e-05, %v1296_v55 }
 0x6c5   : > { %2415 = vrsqrt.f32 %v1304_v43  ;;  %vm1318_vm10 = vweird.f32 %v1304_v43 }
 0x6c8   : > { %v1283_v56 = vpop.xlane.xlu0 %1282 }
 0x6c9   : > { %v1299_v60 = vmul.f32 %v1283_v56, %v3093_v17 }
 0x6cb   : > { %v2416_v54 = vpop.eup %2415  ;;  %v1307_v5 = vadd.f32 1e-05, %v1299_v60 }
 0x6cc   : > { %v1313_v10 = vmul.f32 %v2416_v54, %v1304_v43  ;;  %vm1319_vm9 = vweird.f32 %v2416_v54 }
 0x6cd   : > { %2417 = vrsqrt.f32 %v1307_v5  ;;  %vm1320_vm11 = vmor %vm1318_vm10, %vm1319_vm9  ;;  %vm1348_vm2 = vweird.f32 %v1307_v5 }
 0x6ce   : > { %v1314_v44 = vmul.f32 %v2416_v54, %v1313_v10 }
 0x6d0   : > { %v1315_v40 = vmul.f32 0.5, %v1314_v44 }
 0x6d2   : > { %v1316_v26 = vsub.f32 1.5, %v1315_v40 }
 0x6d3   : > { %v2418_v27 = vpop.eup %2417 }
 0x6d4   : > { %v1317_v33 = vmul.f32 %v2416_v54, %v1316_v26  ;;  %v1343_v32 = vmul.f32 %v2418_v27, %v1307_v5  ;;  %vm1349_vm1 = vweird.f32 %v2418_v27 }
 0x6d5   : > { %vm1350_vm3 = vmor %vm1348_vm2, %vm1349_vm1 }
 0x6d6   : > { %v1321_v18 = vsel %vm1320_vm11, %v2416_v54, %v1317_v33  ;;  %v1344_v45 = vmul.f32 %v2418_v27, %v1343_v32 }
 0x6d7   : > { %v1392_v42 = vmul.f32 %v1321_v18, %v3232_v7  ;;  %v1393_v7 = vmul.f32 %v1331_v23, %v3225_v47 }
 0x6d8   : > { %v1345_v59 = vmul.f32 0.5, %v1344_v45 }
 0x6d9   : > { %v1405_v51 = vmul.f32 %v3289_v31, %v1392_v42  ;;  %v1406_v20 = vmul.f32 %v3289_v31, %v1393_v7 }
 0x6da   : > { %v1346_v15 = vsub.f32 1.5, %v1345_v59 }
 0x6db   : > { %v3292_v30 = vpop.permute.xlu0 %1415 }
 0x6dc   : > { %v1347_v35 = vmul.f32 %v2418_v27, %v1346_v15  ;;  %v1418_v48 = vadd.f32 %v3292_v30, %v1405_v51  ;;  %v1419_v61 = vadd.f32 %v3292_v30, %v1406_v20 }
 0x6de   : > { %v1351_v52 = vsel %vm1350_vm3, %v2418_v27, %v1347_v35  ;;  %1436 = vrot.lane.b32.xlu1 %v1418_v48, %s2666_s28 }
 0x6df   : > { %v1395_v63 = vmul.f32 %v1351_v52, %v3238_v12 }
 0x6e1   : > { %v1408_v8 = vmul.f32 %v3289_v31, %v1395_v63 }
 0x6e3   : > { %v1280_v46 = vpop.xlane.xlu1 %1279  ;;  %v1421_v11 = vadd.f32 %v3292_v30, %v1408_v8 }
 0x6e4   : > { %v1298_v36 = vmul.f32 %v1280_v46, %v3093_v17 }
 0x6e5   : > { %1442 = vrot.lane.b32.xlu0 %v1421_v11, %s2666_s28 }
 0x6e6   : > { %v1306_v55 = vadd.f32 1e-05, %v1298_v36  ;;  %1438 = vrot.lane.b32.xlu1 %v1419_v61, %s2666_s28 }
 0x6e8   : > { %2419 = vrsqrt.f32 %v1306_v55  ;;  %vm1338_vm5 = vweird.f32 %v1306_v55 }
 0x6eb   : > { %v1286_v47 = vpop.xlane.xlu1 %1285 }
 0x6ec   : > { %v1300_v12 = vmul.f32 %v1286_v47, %v3093_v17 }
 0x6ee   : > { %v2420_v43 = vpop.eup %2419  ;;  %v1308_v41 = vadd.f32 1e-05, %v1300_v12 }
 0x6ef   : > { %v1333_v16 = vmul.f32 %v2420_v43, %v1306_v55  ;;  %vm1339_vm4 = vweird.f32 %v2420_v43 }
 0x6f0   : > { %2421 = vrsqrt.f32 %v1308_v41  ;;  %vm1340_vm6 = vmor %vm1338_vm5, %vm1339_vm4  ;;  %vm1358_vm8 = vweird.f32 %v1308_v41  ;;  %vm1669_vm5 = vcmask 31744  }
 0x6f1   : > { %v1334_v56 = vmul.f32 %v2420_v43, %v1333_v16 }
 0x6f3   : > { %v1335_v60 = vmul.f32 0.5, %v1334_v56  ;;  %v1289_v54 = vpop.xlane.xlu1 %1288 }
 0x6f4   : > { %v1301_v22 = vmul.f32 %v1289_v54, %v3093_v17  ;;  %v2369_v54 = vld [vmem:[#allocation7 + $0x208] ss:$0 sm:$0xff] }
 0x6f5   : > { %v1336_v5 = vsub.f32 1.5, %v1335_v60 }
 0x6f6   : > { %v2422_v10 = vpop.eup %2421  ;;  %v1309_v44 = vadd.f32 1e-05, %v1301_v22  ;;  %v1427_v22 = vld [vmem:[#allocation7 + $0x1c8] sm:$0xff] }
 0x6f7   : > { %v1337_v25 = vmul.f32 %v2420_v43, %v1336_v5  ;;  %v1353_v40 = vmul.f32 %v2422_v10, %v1308_v41  ;;  %vm1359_vm7 = vweird.f32 %v2422_v10  ;;  %v1426_v5 = vld [vmem:[#allocation7 + $0x1c0] sm:$0xff]  ;;  %1482 = vmatpush.msra.mxu2 %v1427_v22  ;;  %v2453_v22 = vld [vmem:[#allocation7 + $0x1a8] sm:$0xff] }
 0x6f8   : > { %2423 = vrsqrt.f32 %v1309_v44  ;;  %vm1360_vm9 = vmor %vm1358_vm8, %vm1359_vm7  ;;  %vm1368_vm11 = vweird.f32 %v1309_v44 }
 0x6f9   : > { %v1341_v26 = vsel %vm1340_vm6, %v2420_v43, %v1337_v25  ;;  %v1354_v27 = vmul.f32 %v2422_v10, %v1353_v40  ;;  %1483 = vmatpush.msra.mxu2 %v1426_v5  ;;  %vm1757_vm6 = vcmask 1043456  }
 0x6fa   : > { %v1394_v57 = vmul.f32 %v1341_v26, %v3263_v6 }
 0x6fb   : > { %v1355_v33 = vmul.f32 0.5, %v1354_v27 }
 0x6fc   : > { %v1407_v32 = vmul.f32 %v3289_v31, %v1394_v57 }
 0x6fd   : > { %v1356_v18 = vsub.f32 1.5, %v1355_v33 }
 0x6fe   : > { %v2424_v45 = vpop.eup %2423  ;;  %v1420_v34 = vadd.f32 %v3292_v30, %v1407_v32 }
 0x6ff   : > { %v1357_v42 = vmul.f32 %v2422_v10, %v1356_v18  ;;  %v1363_v59 = vmul.f32 %v2424_v45, %v1309_v44  ;;  %vm1369_vm10 = vweird.f32 %v2424_v45 }
 0x700   : > { %1440 = vrot.lane.b32.xlu1 %v1420_v34, %s2666_s28  ;;  %vm1370_vm13 = vmor %vm1368_vm11, %vm1369_vm10 }
 0x701   : > { %v1361_v51 = vsel %vm1360_vm9, %v2422_v10, %v1357_v42  ;;  %v1364_v15 = vmul.f32 %v2424_v45, %v1363_v59 }
 0x702   : > { %v1396_v23 = vmul.f32 %v1361_v51, %v3244_v24 }
 0x703   : > { %v1365_v35 = vmul.f32 0.5, %v1364_v15 }
 0x704   : > { %v1409_v6 = vmul.f32 %v3289_v31, %v1396_v23 }
 0x705   : > { %v1366_v48 = vsub.f32 1.5, %v1365_v35 }
 0x706   : > { %v1292_v52 = vpop.xlane.xlu0 %1291  ;;  %v1422_v7 = vadd.f32 %v3292_v30, %v1409_v6 }
 0x707   : > { %v1367_v63 = vmul.f32 %v2424_v45, %v1366_v48  ;;  %v1302_v8 = vmul.f32 %v1292_v52, %v3093_v17 }
 0x708   : > { %1444 = vrot.lane.b32.xlu2 %v1422_v7, %s2666_s28 }
 0x709   : > { %v1371_v20 = vsel %vm1370_vm13, %v2424_v45, %v1367_v63  ;;  %v1310_v46 = vadd.f32 1e-05, %v1302_v8 }
 0x70a   : > { %v1397_v11 = vmul.f32 %v1371_v20, %v3247_v14 }
 0x70b   : > { %2425 = vrsqrt.f32 %v1310_v46  ;;  %vm1378_vm15 = vweird.f32 %v1310_v46 }
 0x70c   : > { %v1410_v24 = vmul.f32 %v3289_v31, %v1397_v11 }
 0x70e   : > { %v1423_v36 = vadd.f32 %v3292_v30, %v1410_v24 }
 0x710   : > { %1556 = vrot.lane.b32.xlu2 %v3062_v50, %s2667_s10  ;;  %1446 = vrot.lane.b32.xlu1 %v1423_v36, %s2666_s28 }
 0x711   : > { %v2426_v61 = vpop.eup %2425 }
 0x712   : > { %v1373_v55 = vmul.f32 %v2426_v61, %v1310_v46  ;;  %vm1379_vm14 = vweird.f32 %v2426_v61 }
 0x713   : > { %vm1380_vm1 = vmor %vm1378_vm15, %vm1379_vm14 }
 0x714   : > { %v1374_v47 = vmul.f32 %v2426_v61, %v1373_v55 }
 0x716   : > { %v1375_v12 = vmul.f32 0.5, %v1374_v47 }
 0x718   : > { %v1376_v43 = vsub.f32 1.5, %v1375_v12  ;;  %1562 = vrot.lane.b32.xlu2 %v3077_v38, %s2667_s10 }
 0x71a   : > { %v1377_v14 = vmul.f32 %v2426_v61, %v1376_v43 }
 0x71c   : > { %v1381_v41 = vsel %vm1380_vm1, %v2426_v61, %v1377_v14 }
 0x71d   : > { %v1398_v16 = vmul.f32 %v1381_v41, %v3256_v19 }
 0x71f   : > { %v1411_v56 = vmul.f32 %v3289_v31, %v1398_v16 }
 0x721   : > { %v1424_v60 = vadd.f32 %v3292_v30, %v1411_v56  ;;  %v2451_v56 = vld [vmem:[#allocation7 + $0x1b8] sm:$0xff] }
 0x723   : > { %1448 = vrot.lane.b32.xlu1 %v1424_v60, %s2666_s28 }
 0x72b   : > { %388 = vrot.lane.b32.xlu1 %v2369_v54, %s2665_s5 }
 0x72d   : > { %v1295_v10 = vpop.xlane.xlu2 %1294 }
 0x72e   : > { %v1303_v44 = vmul.f32 %v1295_v10, %v3093_v17  ;;  %v2454_v10 = vld [vmem:[#allocation7 + $0x1a0] sm:$0xff] }
 0x730   : > { %v1311_v25 = vadd.f32 1e-05, %v1303_v44 }
 0x732   : > { %2427 = vrsqrt.f32 %v1311_v25  ;;  %vm1388_vm3 = vweird.f32 %v1311_v25 }
 0x733   : > { %1560 = vrot.lane.b32.xlu1 %v3073_v28, %s2667_s10 }
 0x738   : > { %v2428_v19 = vpop.eup %2427 }
 0x739   : > { %v1383_v40 = vmul.f32 %v2428_v19, %v1311_v25  ;;  %vm1389_vm2 = vweird.f32 %v2428_v19 }
 0x73a   : > { %vm1390_vm4 = vmor %vm1388_vm3, %vm1389_vm2 }
 0x73b   : > { %v1384_v26 = vmul.f32 %v2428_v19, %v1383_v40  ;;  %1566 = vrot.lane.b32.xlu1 %v3085_v3, %s2667_s10  ;;  %v2457_v40 = vld [vmem:[#allocation7 + $0x188] sm:$0xff] }
 0x73d   : > { %v1385_v27 = vmul.f32 0.5, %v1384_v26 }
 0x73f   : > { %v1386_v57 = vsub.f32 1.5, %v1385_v27  ;;  %v2458_v27 = vld [vmem:[#allocation7 + $0x180] sm:$0xff] }
 0x741   : > { %v1387_v33 = vmul.f32 %v2428_v19, %v1386_v57 }
 0x743   : > { %v1391_v32 = vsel %vm1390_vm4, %v2428_v19, %v1387_v33  ;;  %v1517_v33 = vld [vmem:[#allocation7 + $0x1d0] sm:$0xff] }
 0x744   : > { %v1399_v17 = vmul.f32 %v1391_v32, %v3272_v62  ;;  %v1546_v32 = vld [vmem:[#allocation7 + $0x1f0] sm:$0xff] }
 0x746   : > { %v1412_v18 = vmul.f32 %v3289_v31, %v1399_v17  ;;  %v1545_v17 = vld [vmem:[#allocation7 + $0x1e8] sm:$0xff] }
 0x748   : > { %v1425_v45 = vadd.f32 %v3292_v30, %v1412_v18  ;;  %v1544_v18 = vld [vmem:[#allocation7 + $0x1e0] sm:$0xff] }
 0x74a   : > { %1450 = vrot.lane.b32.xlu0 %v1425_v45, %s2666_s28  ;;  %v1543_v45 = vld [vmem:[#allocation7 + $0x1d8] sm:$0xff] }
 0x750   : > { %v1437_v34 = vpop.permute.xlu1 %1436 }
 0x751   : > { %2217 = vmatmul.msk.f32.vlgmr.msra.gmra.mxu2 %vm908_vm12, %v1437_v34 }
 0x752   : > { %1558 = vrot.lane.b32.xlu0 %v3069_v53, %s2667_s10 }
 0x757   : > { %v1443_v31 = vpop.permute.xlu0 %1442 }
 0x758   : > { %v1439_v42 = vpop.permute.xlu1 %1438 }
 0x759   : > { %2218 = vmatmul.msk.f32.gmra.mxu2 %vm908_vm12, %v1439_v42 }
 0x75a   : > { %1564 = vrot.lane.b32.xlu0 %v3081_v49, %s2667_s10 }
 0x762   : > { %1568 = vrot.lane.b32.xlu0 %v3089_v9, %s2667_s10  ;;  %v1445_v30 = vpop.permute.xlu2 %1444 }
 0x76a   : > { %v1557_v35 = vpop.permute.xlu2 %1556 }
 0x772   : > { %v1441_v62 = vpop.permute.xlu1 %1440 }
 0x773   : > { %2219 = vmatmul.msk.f32.gmra.mxu2 %vm908_vm12, %v1441_v62 }
 0x77b   : > { %2220 = vmatmul.msk.f32.gmra.mxu2 %vm908_vm12, %v1443_v31 }
 0x782   : > { %v1447_v59 = vpop.permute.xlu1 %1446 }
 0x783   : > { %2221 = vmatmul.msk.f32.gmra.mxu2 %vm908_vm12, %v1445_v30 }
 0x78b   : > { %2222 = vmatmul.msk.f32.gmra.mxu2 %vm908_vm12, %v1447_v59 }
 0x795   : > { %v1449_v51 = vpop.permute.xlu1 %1448 }
 0x796   : > { %2223 = vmatmul.msk.f32.gmra.mxu2 %vm908_vm12, %v1449_v51 }
 0x79d   : > { %v389_v15 = vpop.permute.xlu1 %388 }
 0x79e   : > { %v391_v23 = vadd.f32 %v389_v15, %v2905_v0  ;;  %v393_v48 = vadd.f32 %v389_v15, %v2909_v2  ;;  %v396_v63 = vadd.f32 %v389_v15, %v2933_v21  ;;  %v392_v2 = vadd.f32 %v389_v15, %v2907_v1 }
 0x79f   : > { %v394_v21 = vadd.f32 %v389_v15, %v2911_v4  ;;  %v395_v24 = vadd.f32 %v389_v15, %v2923_v13  ;;  %v397_v1 = vadd.f32 %v389_v15, %v2941_v29 }
 0x7a0   : > { %v1580_v6 = vmul.f32 %v1557_v35, %v391_v23 }
 0x7a2   : > { %1596 = vrot.lane.b32.xlu2 %v1580_v6, %s2666_s28 }
 0x7a5   : > { %v1561_v52 = vpop.permute.xlu1 %1560 }
 0x7a6   : > { %v1582_v7 = vmul.f32 %v1561_v52, %v393_v48 }
 0x7a8   : > { %1600 = vrot.lane.b32.xlu0 %v1582_v7, %s2666_s28 }
 0x7aa   : > { %1570 = vrot.lane.b32.xlu2 %v3104_v39, %s2667_s10 }
 0x7ad   : > { %v1567_v8 = vpop.permute.xlu1 %1566 }
 0x7ae   : > { %v1585_v20 = vmul.f32 %v1567_v8, %v396_v63 }
 0x7b0   : > { %1606 = vrot.lane.b32.xlu0 %v1585_v20, %s2666_s28 }
 0x7b8   : > { %1802 = vrot.lane.b32.xlu0 %v3062_v50, %s2668_s13  ;;  %v1563_v50 = vpop.permute.xlu2 %1562 }
 0x7b9   : > { %v1583_v55 = vmul.f32 %v1563_v50, %v394_v21 }
 0x7bc   : > { %v1451_v0 = vpop.permute.xlu0 %1450 }
 0x7bd   : > { %2224 = vmatmul.msk.f32.gmra.mxu2 %vm908_vm12, %v1451_v0  ;;  %vm1518_vm12 = vcmask 523264  }
 0x7c0   : > { %1808 = vrot.lane.b32.xlu0 %v3077_v38, %s2668_s13 }
 0x7c4   : > { %v1559_v46 = vpop.permute.xlu0 %1558 }
 0x7c5   : > { %v1581_v11 = vmul.f32 %v1559_v46, %v392_v2 }
 0x7c7   : > { %1598 = vrot.lane.b32.xlu1 %v1581_v11, %s2666_s28 }
 0x7c8   : > { %1814 = vrot.lane.b32.xlu0 %v3089_v9, %s2668_s13  ;;  %v398_v9 = vadd.f32 %v389_v15, %v2950_v37  ;;  %v2452_v37 = vld [vmem:[#allocation7 + $0x1b0] sm:$0xff] }
 0x7cc   : > { %v1565_v36 = vpop.permute.xlu0 %1564 }
 0x7cd   : > { %v1584_v61 = vmul.f32 %v1565_v36, %v395_v24 }
 0x7cf   : > { %1602 = vrot.lane.b32.xlu1 %v1583_v55, %s2666_s28  ;;  %1604 = vrot.lane.b32.xlu2 %v1584_v61, %s2666_s28 }
 0x7d4   : > { %v1569_v38 = vpop.permute.xlu0 %1568  ;;  %v1485_v13 = vpop.f32.mrf.mxu2 }
 0x7d5   : > { %v1586_v47 = vmul.f32 %v1569_v38, %v397_v1  ;;  %v1509_v57 = vmul.f32 %v2458_v27, %v1485_v13  ;;  %v1547_v38 = vld [vmem:[#allocation7 + $0x1f8] sm:$0xf] }
 0x7d6   : > { %2234 = vmatpush.msk.msra.mxu0 %vm1757_vm6, %v1547_v38 }
 0x7d7   : > { %1608 = vrot.lane.b32.xlu1 %v1586_v47, %s2666_s28 }
 0x7dc   : > { %v1488_v29 = vpop.f32.mrf.mxu2 }
 0x7dd   : > { %v1510_v26 = vmul.f32 %v2457_v40, %v1488_v29 }
 0x7df   : > { %1804 = vrot.lane.b32.xlu1 %v3069_v53, %s2668_s13 }
 0x7e7   : > { %1810 = vrot.lane.b32.xlu1 %v3081_v49, %s2668_s13 }
 0x7ef   : > { %1816 = vrot.lane.b32.xlu1 %v3104_v39, %s2668_s13 }
 0x7f6   : > { %v1491_v14 = vpop.f32.mrf.mxu2 }
 0x7fc   : > { %v1597_v4 = vpop.permute.xlu2 %1596 }
 0x7fe   : > { %v1494_v53 = vpop.f32.mrf.mxu2 }
 0x804   : > { %v1571_v12 = vpop.permute.xlu2 %1570 }
 0x805   : > { %v1587_v43 = vmul.f32 %v1571_v12, %v398_v9 }
 0x806   : > { %v1497_v49 = vpop.f32.mrf.mxu2 }
 0x807   : > { %1610 = vrot.lane.b32.xlu2 %v1587_v43, %s2666_s28  ;;  %v1513_v44 = vmul.f32 %v2454_v10, %v1497_v49 }
 0x80e   : > { %v1500_v41 = vpop.f32.mrf.mxu2 }
 0x80f   : > { %1806 = vrot.lane.b32.xlu2 %v3073_v28, %s2668_s13  ;;  %v1514_v5 = vmul.f32 %v2453_v22, %v1500_v41  ;;  %v2455_v28 = vld [vmem:[#allocation7 + $0x198] sm:$0xff] }
 0x810   : > { %v1512_v25 = vmul.f32 %v2455_v28, %v1494_v53 }
 0x817   : > { %1812 = vrot.lane.b32.xlu2 %v3085_v3, %s2668_s13  ;;  %v2456_v3 = vld [vmem:[#allocation7 + $0x190] sm:$0xff] }
 0x818   : > { %v1511_v19 = vmul.f32 %v2456_v3, %v1491_v14 }
 0x819   : > { %v1503_v39 = vpop.f32.mrf.mxu2 }
 0x81a   : > { %v1515_v54 = vmul.f32 %v2452_v37, %v1503_v39  ;;  %v1601_v42 = vpop.permute.xlu0 %1600 }
 0x822   : > { %v1607_v30 = vpop.permute.xlu0 %1606 }
 0x829   : > { %v1605_v31 = vpop.permute.xlu2 %1604 }
 0x839   : > { %v1599_v34 = vpop.permute.xlu1 %1598 }
 0x840   : > { %v1506_v16 = vpop.f32.mrf.mxu2 }
 0x841   : > { %v1516_v60 = vmul.f32 %v2451_v56, %v1506_v16  ;;  %v1603_v62 = vpop.permute.xlu1 %1602 }
 0x843   : > { %1530 = vmatpush.msrb.mxu3 %v1516_v60 }
 0x845   : > { %1531 = vmatpush.msrb.mxu3 %v1515_v54 }
 0x847   : > { %1532 = vmatpush.msrb.mxu3 %v1514_v5 }
 0x849   : > { %1533 = vmatpush.msrb.mxu3 %v1513_v44  ;;  %v1609_v59 = vpop.permute.xlu1 %1608 }
 0x84b   : > { %1534 = vmatpush.msrb.mxu3 %v1512_v25 }
 0x84d   : > { %1535 = vmatpush.msrb.mxu3 %v1511_v19 }
 0x84f   : > { %1536 = vmatpush.msrb.mxu3 %v1510_v26 }
 0x851   : > { %1537 = vmatpush.msrb.mxu3 %v1509_v57 }
 0x852   : > { %2225 = vmatmul.msk.f32.vlgmr.msrb.gmra.mxu3 %vm1518_vm12, %v1517_v33 }
 0x853   : > { %1640 = vmatpush.msra.mxu3 %v1546_v32 }
 0x855   : > { %1641 = vmatpush.msra.mxu3 %v1545_v17 }
 0x857   : > { %1642 = vmatpush.msra.mxu3 %v1544_v18 }
 0x859   : > { %1643 = vmatpush.msra.mxu3 %v1543_v45 }
 0x85a   : > { %2226 = vmatmul.msk.f32.vlgmr.msra.gmra.mxu3 %vm287_vm0, %v1597_v4 }
 0x861   : > { %v1611_v51 = vpop.permute.xlu2 %1610 }
 0x862   : > { %2227 = vmatmul.msk.f32.gmra.mxu3 %vm287_vm0, %v1599_v34 }
 0x869   : > { %v1807_v38 = vpop.permute.xlu2 %1806 }
 0x86a   : > { %2228 = vmatmul.msk.f32.gmra.mxu3 %vm287_vm0, %v1601_v42 }
 0x872   : > { %2229 = vmatmul.msk.f32.gmra.mxu3 %vm287_vm0, %v1603_v62 }
 0x87a   : > { %2230 = vmatmul.msk.f32.gmra.mxu3 %vm287_vm0, %v1605_v31 }
 0x882   : > { %2231 = vmatmul.msk.f32.gmra.mxu3 %vm287_vm0, %v1607_v30 }
 0x88a   : > { %2232 = vmatmul.msk.f32.gmra.mxu3 %vm287_vm0, %v1609_v59 }
 0x892   : > { %2233 = vmatmul.msk.f32.gmra.mxu3 %vm287_vm0, %v1611_v51 }
 0x8d5   : > { %v1539_v15 = vpop.f32.mrf.mxu3 }
 0x8d6   : > { %1542 = vst [vmem:[%s280_s7] sm:$0xff] %v1539_v15 }
 0x8dd   : > { %v1645_v23 = vpop.f32.mrf.mxu3 }
 0x8de   : > { %v1670_v21 = vsel %vm1669_vm5, %v1645_v23, -inf }
 0x8e5   : > { %v1648_v35 = vpop.f32.mrf.mxu3 }
 0x8e6   : > { %v1671_v20 = vsel %vm1669_vm5, %v1648_v35, -inf }
 0x8ed   : > { %v1651_v6 = vpop.f32.mrf.mxu3 }
 0x8ee   : > { %v1672_v24 = vsel %vm1669_vm5, %v1651_v6, -inf }
 0x8f5   : > { %v1654_v48 = vpop.f32.mrf.mxu3 }
 0x8f6   : > { %v1673_v50 = vsel %vm1669_vm5, %v1654_v48, -inf }
 0x8fd   : > { %v1657_v52 = vpop.f32.mrf.mxu3 }
 0x8fe   : > { %v1674_v0 = vsel %vm1669_vm5, %v1657_v52, -inf }
 0x8ff   : > { %v1675_v61 = vmax.f32 %v1670_v21, %v1674_v0 }
 0x905   : > { %v1660_v7 = vpop.f32.mrf.mxu3 }
 0x906   : > { %v1676_v8 = vsel %vm1669_vm5, %v1660_v7, -inf }
 0x907   : > { %v1677_v46 = vmax.f32 %v1671_v20, %v1676_v8 }
 0x909   : > { %v1682_v47 = vmax.f32 %v1675_v61, %v1677_v46  ;;  %v1852_v46 = vld [vmem:[#allocation7 + $0x58] sm:$0xff]  ;;  %v1849_v61 = vld [vmem:[#allocation7 + $0x40] sm:$0xff] }
 0x90a   : > { %1870 = vmatpush.msrb.mxu1 %v1852_v46  ;;  %v1940_v46 = vld [vmem:[#allocation7 + $0x98] sm:$0xff] }
 0x90d   : > { %v1663_v63 = vpop.f32.mrf.mxu3 }
 0x90e   : > { %v1678_v2 = vsel %vm1669_vm5, %v1663_v63, -inf }
 0x90f   : > { %v1679_v55 = vmax.f32 %v1672_v24, %v1678_v2  ;;  %v1851_v24 = vld [vmem:[#allocation7 + $0x50] sm:$0xff] }
 0x910   : > { %1871 = vmatpush.msrb.mxu1 %v1851_v24 }
 0x915   : > { %v1666_v11 = vpop.f32.mrf.mxu3 }
 0x916   : > { %v1680_v36 = vsel %vm1669_vm5, %v1666_v11, -inf }
 0x917   : > { %v1681_v1 = vmax.f32 %v1673_v50, %v1680_v36  ;;  %v1850_v50 = vld [vmem:[#allocation7 + $0x48] sm:$0xff]  ;;  %v1803_v36 = vpop.permute.xlu0 %1802 }
 0x918   : > { %1872 = vmatpush.msrb.mxu1 %v1850_v50 }
 0x919   : > { %v1683_v4 = vmax.f32 %v1679_v55, %v1681_v1  ;;  %v1805_v1 = vpop.permute.xlu1 %1804 }
 0x91a   : > { %1873 = vmatpush.msrb.mxu1 %v1849_v61 }
 0x91b   : > { %v1684_v13 = vmax.f32 %v1682_v47, %v1683_v4 }
 0x91d   : > { %v1685_v9 = vsub.f32 %v1645_v23, %v1684_v13  ;;  %v1686_v12 = vsub.f32 %v1648_v35, %v1684_v13  ;;  %v1687_v43 = vsub.f32 %v1651_v6, %v1684_v13  ;;  %v1688_v29 = vsub.f32 %v1654_v48, %v1684_v13 }
 0x91e   : > { %v1689_v14 = vsub.f32 %v1657_v52, %v1684_v13  ;;  %v1690_v39 = vsub.f32 %v1660_v7, %v1684_v13  ;;  %v1691_v56 = vsub.f32 %v1663_v63, %v1684_v13  ;;  %v1692_v37 = vsub.f32 %v1666_v11, %v1684_v13 }
 0x91f   : > { %v1693_v53 = vmul.f32 1.442695, %v1685_v9  ;;  %v1695_v49 = vmul.f32 1.442695, %v1686_v12  ;;  %v1697_v41 = vmul.f32 1.442695, %v1687_v43  ;;  %v1809_v47 = vpop.permute.xlu0 %1808 }
 0x920   : > { %v1699_v16 = vmul.f32 1.442695, %v1688_v29  ;;  %v1701_v60 = vmul.f32 1.442695, %v1689_v14  ;;  %v1703_v54 = vmul.f32 1.442695, %v1690_v39  ;;  %v1813_v39 = vpop.permute.xlu2 %1812 }
 0x921   : > { %2429 = vpow2.f32 %v1693_v53  ;;  %v1705_v22 = vmul.f32 1.442695, %v1691_v56  ;;  %v1707_v44 = vmul.f32 1.442695, %v1692_v37  ;;  %v1811_v14 = vpop.permute.xlu1 %1810 }
 0x922   : > { %2431 = vpow2.f32 %v1695_v49 }
 0x923   : > { %2433 = vpow2.f32 %v1697_v41 }
 0x924   : > { %2435 = vpow2.f32 %v1699_v16 }
 0x925   : > { %2437 = vpow2.f32 %v1701_v60 }
 0x926   : > { %2439 = vpow2.f32 %v1703_v54 }
 0x927   : > { %v2430_v5 = vpop.eup %2429  ;;  %2441 = vpow2.f32 %v1705_v22  ;;  %v1815_v54 = vpop.permute.xlu0 %1814 }
 0x928   : > { %v2432_v10 = vpop.eup %2431  ;;  %v1709_v28 = vsel %vm1669_vm5, %v2430_v5, 0.0  ;;  %2443 = vpow2.f32 %v1707_v44 }
 0x929   : > { %v2434_v25 = vpop.eup %2433  ;;  %v1710_v3 = vsel %vm1669_vm5, %v2432_v10, 0.0 }
 0x92a   : > { %v2436_v19 = vpop.eup %2435  ;;  %v1711_v40 = vadd.f32 %v1710_v3, %v1709_v28  ;;  %v1712_v26 = vsel %vm1669_vm5, %v2434_v25, 0.0 }
 0x92b   : > { %v2438_v27 = vpop.eup %2437  ;;  %v1714_v33 = vsel %vm1669_vm5, %v2436_v19, 0.0 }
 0x92c   : > { %v1713_v57 = vadd.f32 %v1712_v26, %v1711_v40  ;;  %v2440_v32 = vpop.eup %2439  ;;  %v1716_v18 = vsel %vm1669_vm5, %v2438_v27, 0.0 }
 0x92d   : > { %v2442_v45 = vpop.eup %2441  ;;  %v1718_v42 = vsel %vm1669_vm5, %v2440_v32, 0.0 }
 0x92e   : > { %v1715_v17 = vadd.f32 %v1714_v33, %v1713_v57  ;;  %v2444_v62 = vpop.eup %2443  ;;  %v1720_v30 = vsel %vm1669_vm5, %v2442_v45, 0.0 }
 0x92f   : > { %v1722_v51 = vsel %vm1669_vm5, %v2444_v62, 0.0 }
 0x930   : > { %v1717_v34 = vadd.f32 %v1716_v18, %v1715_v17  ;;  %v2370_v17 = vld [vmem:[#allocation7 + $0x209] ss:$0 sm:$0xff] }
 0x932   : > { %v1719_v31 = vadd.f32 %v1718_v42, %v1717_v34  ;;  %v2459_v34 = vld [vmem:[%s230_s30] sm:$0xff]  ;;  %s2564_s30 = sshra.s32 %s2035_s2, 4  ;;  %s2565_s30 = int_to_ptr.hbm [resolvable:$true] %s2564_s30 }
 0x933   : > { %s2566_s17 = scalar_lea.hbm %s2565_s30, 8  ;;  %p2571_p5 = scmp.lt.s32.totalorder %s2565_s30, %s3501_s4 }
 0x934   : > { %v1721_v59 = vadd.f32 %v1720_v30, %v1719_v31  ;;  %p2567_p1 = scmp.ne.s32.totalorder %s2565_s30, %s2566_s17  ;;  %p2572_p7 = scmp.lt.s32.totalorder %s2570_s26, %s2566_s17 }
 0x936   : > { %v1723_v15 = vadd.f32 %v1722_v51, %v1721_v59  ;;  %p2568_p3 = pnand %p2567_p1, %p2757_p13  ;;  %p2573_p6 = por %p2572_p7, %p2571_p5 }
 0x938   : > { %2445 = vrcp.f32 %v1723_v15  ;;  %p2569_p12 = pneg %p2568_p3 }
 0x93a   : > { %p2574_p8 = pnand %p2573_p6, %p2569_p12 }
 0x93e   : > { %v2446_v23 = vpop.eup %2445 }
 0x93f   : > { %v1725_v35 = vmul.f32 %v2446_v23, %v2430_v5  ;;  %v1726_v6 = vmul.f32 %v2446_v23, %v2432_v10  ;;  %v1727_v48 = vmul.f32 %v2446_v23, %v2434_v25  ;;  %v1728_v52 = vmul.f32 %v2446_v23, %v2436_v19  ;;  %v1817_v19 = vpop.permute.xlu1 %1816 }
 0x940   : > { %v1729_v7 = vmul.f32 %v2446_v23, %v2438_v27  ;;  %v1730_v63 = vmul.f32 %v2446_v23, %v2440_v32  ;;  %v1731_v8 = vmul.f32 %v2446_v23, %v2442_v45  ;;  %v1732_v20 = vmul.f32 %v2446_v23, %v2444_v62  ;;  %v1910_v23 = vld [vmem:[#allocation7 + $0x78] sm:$0xff] }
 0x941   : > { %2235 = vmatmul.msk.f32.vlgmr.msra.gmra.mxu0 %vm1669_vm5, %v1725_v35  ;;  %v1909_v35 = vld [vmem:[#allocation7 + $0x70] sm:$0xff]  ;;  %1928 = vmatpush.msrb.mxu2 %v1910_v23 }
 0x943   : > { %1929 = vmatpush.msrb.mxu2 %v1909_v35 }
 0x949   : > { %2236 = vmatmul.msk.f32.gmra.mxu0 %vm1669_vm5, %v1726_v6  ;;  %v1908_v6 = vld [vmem:[#allocation7 + $0x68] sm:$0xff] }
 0x94a   : > { %1930 = vmatpush.msrb.mxu2 %v1908_v6 }
 0x951   : > { %2237 = vmatmul.msk.f32.gmra.mxu0 %vm1669_vm5, %v1727_v48  ;;  %v1907_v48 = vld [vmem:[#allocation7 + $0x60] sm:$0xff] }
 0x952   : > { %1931 = vmatpush.msrb.mxu2 %v1907_v48 }
 0x959   : > { %2238 = vmatmul.msk.f32.gmra.mxu0 %vm1669_vm5, %v1728_v52  ;;  %v1944_v52 = vld [vmem:[#allocation7 + $0xb8] sm:$0xff] }
 0x95a   : > { %1958 = vmatpush.msrb.mxu3 %v1944_v52 }
 0x961   : > { %2239 = vmatmul.msk.f32.gmra.mxu0 %vm1669_vm5, %v1729_v7  ;;  %v1943_v7 = vld [vmem:[#allocation7 + $0xb0] sm:$0xff] }
 0x962   : > { %1959 = vmatpush.msrb.mxu3 %v1943_v7 }
 0x969   : > { %2240 = vmatmul.msk.f32.gmra.mxu0 %vm1669_vm5, %v1730_v63  ;;  %v1942_v63 = vld [vmem:[#allocation7 + $0xa8] sm:$0xff] }
 0x96a   : > { %1960 = vmatpush.msrb.mxu3 %v1942_v63 }
 0x971   : > { %2241 = vmatmul.msk.f32.gmra.mxu0 %vm1669_vm5, %v1731_v8 }
 0x979   : > { %2242 = vmatmul.msk.f32.gmra.mxu0 %vm1669_vm5, %v1732_v20 }
 0x9be   : > { %v1778_v0 = vpop.f32.mrf.mxu0 }
 0x9bf   : > { %v1826_v9 = vmul.f32 %v1803_v36, %v1778_v0  ;;  %v1941_v0 = vld [vmem:[#allocation7 + $0xa0] sm:$0xff] }
 0x9c0   : > { %1961 = vmatpush.msrb.mxu3 %v1941_v0 }
 0x9c1   : > { %v1834_v53 = vsel %vm287_vm0, %v1826_v9, 0.0  ;;  %v1939_v9 = vld [vmem:[#allocation7 + $0x90] sm:$0xff] }
 0x9c2   : > { %1962 = vmatpush.msrb.mxu3 %v1940_v46 }
 0x9c4   : > { %1963 = vmatpush.msrb.mxu3 %v1939_v9 }
 0x9c6   : > { %v1781_v2 = vpop.f32.mrf.mxu0 }
 0x9c7   : > { %v1827_v13 = vmul.f32 %v1805_v1, %v1781_v2 }
 0x9c9   : > { %v1835_v43 = vsel %vm287_vm0, %v1827_v13, 0.0 }
 0x9ca   : > { %v1836_v16 = vadd.f32 %v1835_v43, %v1834_v53  ;;  %v1937_v43 = vld [vmem:[#allocation7 + $0x80] sm:$0xff] }
 0x9ce   : > { %v1784_v11 = vpop.f32.mrf.mxu0 }
 0x9cf   : > { %v1828_v12 = vmul.f32 %v1807_v38, %v1784_v11 }
 0x9d1   : > { %v1837_v49 = vsel %vm287_vm0, %v1828_v12, 0.0  ;;  %v1938_v12 = vld [vmem:[#allocation7 + $0x88] sm:$0xff] }
 0x9d2   : > { %v1838_v22 = vadd.f32 %v1837_v49, %v1836_v16  ;;  %1964 = vmatpush.msrb.mxu3 %v1938_v12 }
 0x9d4   : > { %1965 = vmatpush.msrb.mxu3 %v1937_v43 }
 0x9d6   : > { %v1787_v21 = vpop.f32.mrf.mxu0 }
 0x9d7   : > { %v1829_v29 = vmul.f32 %v1809_v47, %v1787_v21  ;;  %v2372_v47 = vld [vmem:[#allocation7 + $0x20b] ss:$0 sm:$0xff] }
 0x9d9   : > { %v1839_v60 = vsel %vm287_vm0, %v1829_v29, 0.0  ;;  %v2373_v29 = vld [vmem:[#allocation7 + $0x20c] ss:$0 sm:$0xff] }
 0x9da   : > { %v1840_v44 = vadd.f32 %v1839_v60, %v1838_v22 }
 0x9de   : > { %v1790_v55 = vpop.f32.mrf.mxu0 }
 0x9df   : > { %v1830_v41 = vmul.f32 %v1811_v14, %v1790_v55  ;;  %v2371_v55 = vld [vmem:[#allocation7 + $0x20a] ss:$0 sm:$0xff] }
 0x9e1   : > { %v1841_v5 = vsel %vm287_vm0, %v1830_v41, 0.0  ;;  %v2374_v41 = vld [vmem:[#allocation7 + $0x20d] ss:$0 sm:$0xff] }
 0x9e2   : > { %v1842_v25 = vadd.f32 %v1841_v5, %v1840_v44 }
 0x9e6   : > { %v1793_v4 = vpop.f32.mrf.mxu0 }
 0x9e7   : > { %v1831_v37 = vmul.f32 %v1813_v39, %v1793_v4 }
 0x9e9   : > { %v1843_v28 = vsel %vm287_vm0, %v1831_v37, 0.0 }
 0x9ea   : > { %v1844_v40 = vadd.f32 %v1843_v28, %v1842_v25 }
 0x9ee   : > { %v1796_v56 = vpop.f32.mrf.mxu0 }
 0x9ef   : > { %v1832_v10 = vmul.f32 %v1815_v54, %v1796_v56 }
 0x9f1   : > { %v1845_v3 = vsel %vm287_vm0, %v1832_v10, 0.0 }
 0x9f2   : > { %v1846_v57 = vadd.f32 %v1845_v3, %v1844_v40 }
 0x9f6   : > { %v1799_v26 = vpop.f32.mrf.mxu0 }
 0x9f7   : > { %v1833_v27 = vmul.f32 %v1817_v19, %v1799_v26 }
 0x9f9   : > { %v1847_v33 = vsel %vm287_vm0, %v1833_v27, 0.0 }
 0x9fa   : > { %v1848_v32 = vadd.f32 %v1847_v33, %v1846_v57 }
 0x9fc   : > { %2243 = vmatmul.msk.f32.vlgmr.msrb.gmra.mxu1 %vm287_vm0, %v1848_v32 }
 0xa79   : > { %v1875_v18 = vpop.f32.mrf.mxu1 }
 0xa7a   : > { %v1876_v45 = vadd.f32 %v2370_v17, %v1875_v18 }
 0xa7c   : > { %v1878_v42 = vadd.f32 %v2459_v34, %v1876_v45 }
 0xa7e   : > { %v1881_v62 = vsel %vm287_vm0, %v1878_v42, 0.0 }
 0xa7f   : > { %1882 = vadd.xlane.f32.xlu2 %v1881_v62 }
 0xaf2   : > { %v1883_v31 = vpop.xlane.xlu2 %1882 }
 0xaf3   : > { %v1884_v30 = vmul.f32 %v1883_v31, %v2965_v58 }
 0xaf5   : > { %v1885_v59 = vsub.f32 %v1878_v42, %v1884_v30 }
 0xaf7   : > { %v1886_v51 = vmul.f32 %v1885_v59, %v1885_v59 }
 0xaf9   : > { %v1887_v15 = vsel %vm287_vm0, %v1886_v51, 0.0 }
 0xafa   : > { %1888 = vadd.xlane.f32.xlu0 %v1887_v15 }
 0xb6d   : > { %v1889_v8 = vpop.xlane.xlu0 %1888 }
 0xb6e   : > { %v1890_v20 = vmul.f32 %v1889_v8, %v2965_v58 }
 0xb70   : > { %v1891_v2 = vadd.f32 1e-05, %v1890_v20 }
 0xb72   : > { %2447 = vrsqrt.f32 %v1891_v2  ;;  %vm1898_vm8 = vweird.f32 %v1891_v2 }
 0xb78   : > { %v2448_v11 = vpop.eup %2447 }
 0xb79   : > { %v1893_v21 = vmul.f32 %v2448_v11, %v1891_v2  ;;  %vm1899_vm7 = vweird.f32 %v2448_v11 }
 0xb7a   : > { %vm1900_vm9 = vmor %vm1898_vm8, %vm1899_vm7 }
 0xb7b   : > { %v1894_v24 = vmul.f32 %v2448_v11, %v1893_v21 }
 0xb7d   : > { %v1895_v50 = vmul.f32 0.5, %v1894_v24 }
 0xb7f   : > { %v1896_v36 = vsub.f32 1.5, %v1895_v50 }
 0xb81   : > { %v1897_v61 = vmul.f32 %v2448_v11, %v1896_v36 }
 0xb83   : > { %v1901_v1 = vsel %vm1900_vm9, %v2448_v11, %v1897_v61 }
 0xb84   : > { %v1902_v38 = vmul.f32 %v1901_v1, %v1885_v59 }
 0xb86   : > { %v1904_v4 = vmul.f32 %v2371_v55, %v1902_v38 }
 0xb88   : > { %v1906_v13 = vadd.f32 %v2372_v47, %v1904_v4 }
 0xb8a   : > { %2244 = vmatmul.msk.f32.vlgmr.msrb.gmra.mxu2 %vm287_vm0, %v1906_v13 }
 0xc0d   : > { %v1933_v14 = vpop.f32.mrf.mxu2 }
 0xc0e   : > { %v1934_v53 = vadd.f32 %v2373_v29, %v1933_v14 }
 0xc10   : > { %v1936_v49 = vmax.f32 %v1934_v53, 0.0 }
 0xc12   : > { %2245 = vmatmul.msk.f32.vlgmr.msrb.gmra.mxu3 %vm1518_vm12, %v1936_v49 }
 0xc95   : > { %v1967_v39 = vpop.f32.mrf.mxu3 }
 0xc96   : > { %v1968_v16 = vadd.f32 %v2374_v41, %v1967_v39 }
 0xc98   : > { %v1970_v56 = vadd.f32 %v1968_v16, %v1906_v13 }
 0xc9a   : > { %v1973_v60 = vsel %vm287_vm0, %v1970_v56, 0.0 }
 0xc9b   : > { %1974 = vadd.xlane.f32.xlu1 %v1973_v60 }
 0xd0e   : > { %v1975_v37 = vpop.xlane.xlu1 %1974 }
 0xd0f   : > { %v1976_v54 = vmul.f32 %v1975_v37, %v2965_v58 }
 0xd11   : > { %v1977_v22 = vsub.f32 %v1970_v56, %v1976_v54 }
 0xd13   : > { %v1978_v5 = vmul.f32 %v1977_v22, %v1977_v22 }
 0xd15   : > { %v1979_v10 = vsel %vm287_vm0, %v1978_v5, 0.0 }
 0xd16   : > { %1980 = vadd.xlane.f32.xlu2 %v1979_v10 }
 0xd17   : > { %2577 = shalt.err (!%p2574_p8)
}
 0xd18   : > { %2293 = dma.vmem_to_hbm [thread:$0]  (%p2757_p13), %s2033_s20, 128, %s2035_s2, %s2006_s25   ;;  %v2375_v33 = vld [vmem:[#allocation7 + $0x20e] ss:$0 sm:$0xff]  ;;  %v2376_v17 = vld [vmem:[#allocation7 + $0x20f] ss:$0 sm:$0xff] }
 0xd19   : > { %s2016_s13 = scalar_lea.hbm %s3500_s3, %s2248_s14  ;;  %s273_s7 = scalar_lea.vmem [#allocation8], %s2811_s21 }
 0xd1a   : > { %s2018_s20 = sshll.u32 %s273_s7, 4  ;;  %s2020_s19 = sshll.u32 %s2016_s13, 4  ;;  %s2019_s20 = int_to_ptr.vmem [resolvable:$true] %s2018_s20  ;;  %s2021_s19 = int_to_ptr.hbm [resolvable:$true] %s2020_s19 }
 0xd1b   : > { %s2001_s24 = scalar_lea.sflag [#allocation4], %s2808_s12  ;;  %s2592_s27 = sshra.s32 %s2021_s19, 4  ;;  %s2593_s27 = int_to_ptr.hbm [resolvable:$true] %s2592_s27 }
 0xd1c   : > { %s2594_s22 = scalar_lea.hbm %s2593_s27, 8  ;;  %s2598_s21 = scalar_lea.hbm %s3500_s3, 32 }
 0xd1d   : > { %p2595_p10 = scmp.ne.s32.totalorder %s2593_s27, %s2594_s22  ;;  %p2599_p0 = scmp.lt.s32.totalorder %s2593_s27, %s3500_s3 }
 0xd1e   : > { %p2600_p2 = scmp.lt.s32.totalorder %s2598_s21, %s2594_s22 }
 0xd1f   : > { %p2596_p9 = pnand %p2595_p10, %p2757_p13 }
 0xd20   : > { %p2601_p1 = por %p2600_p2, %p2599_p0 }
 0xd21   : > { %p2597_p11 = pneg %p2596_p9 }
 0xd23   : > { %p2602_p3 = pnand %p2601_p1, %p2597_p11 }
 0xd89   : > { %v1981_v44 = vpop.xlane.xlu2 %1980 }
 0xd8a   : > { %v1982_v28 = vmul.f32 %v1981_v44, %v2965_v58 }
 0xd8c   : > { %v1983_v25 = vadd.f32 1e-05, %v1982_v28 }
 0xd8e   : > { %2449 = vrsqrt.f32 %v1983_v25  ;;  %vm1990_vm11 = vweird.f32 %v1983_v25 }
 0xd94   : > { %v2450_v3 = vpop.eup %2449 }
 0xd95   : > { %v1985_v19 = vmul.f32 %v2450_v3, %v1983_v25  ;;  %vm1991_vm10 = vweird.f32 %v2450_v3 }
 0xd96   : > { %vm1992_vm13 = vmor %vm1990_vm11, %vm1991_vm10 }
 0xd97   : > { %v1986_v40 = vmul.f32 %v2450_v3, %v1985_v19 }
 0xd99   : > { %v1987_v26 = vmul.f32 0.5, %v1986_v40 }
 0xd9b   : > { %v1988_v27 = vsub.f32 1.5, %v1987_v26 }
 0xd9d   : > { %v1989_v57 = vmul.f32 %v2450_v3, %v1988_v27 }
 0xd9f   : > { %v1993_v58 = vsel %vm1992_vm13, %v2450_v3, %v1989_v57 }
 0xda0   : > { %v1994_v32 = vmul.f32 %v1993_v58, %v1977_v22 }
 0xda2   : > { %v1996_v18 = vmul.f32 %v2375_v33, %v1994_v32 }
 0xda4   : > { %v1998_v45 = vadd.f32 %v2376_v17, %v1996_v18 }
 0xda6   : > { %1999 = vst.msk [vmem:[%s273_s7] sm:$0xff] %vm287_vm0, %v1998_v45 }
 0xda7   : > { %2605 = shalt.err (!%p2602_p3)
}
 0xda8   : > { %2292 = dma.vmem_to_hbm [thread:$0]  (%p2757_p13), %s2019_s20, 128, %s2021_s19, %s2001_s24  }
 0xda9 PF: > { %p2317_p12 = scmp.ge.s32.totalorder %s2656_s18, 2  ;;  %s2046_s12 = sand.u32 1, %s2644_s15  }
 0xdaa   : > { %s2047_s17 = scalar_lea.sflag [#allocation4], %s2046_s12 }
 0xdab   : > { %p2308_p5 = pnand %p2317_p12, %p2763_p4 }
 0xdad   : > { %p2309_p7 = pneg %p2308_p5 }
 0xdaf   : > { %2635 = dma.done.wait (%p2309_p7), %s2047_s17, 128  }
 0xdb0   : > { %2637 = vsyncadd (%p2309_p7), %s2047_s17, 4294967168  ;;  %s2057_s23 = scalar_lea.sflag [#allocation10], %s2046_s12 }
 0xdb1   : > { %2639 = dma.done.wait (%p2309_p7), %s2057_s23, 128  }
 0xdb2   : > { %2641 = vsyncadd (%p2309_p7), %s2057_s23, 4294967168  ;;  %s3513_s6 = sld [smem:[#allocation16_spill]]  ;;  %p24_p13 = scmp.ge.s32.totalorder %s2733_s29, 6  }
 0xdb3   : > { %s3514_s17 = sld [smem:[#allocation17_spill]]  ;;  %s3515_s15 = smov %s2648_s16 }
 0xdb4   : > { %s3517_s18 = smov %s2733_s29  ;;  %26 = sbr.rel (!%p24_p13) target bundleno = 11 (0xb), region = 111 }
 0xdb8   : > { %s3516_s16 = smov %s3513_s6 }
 0xdb9   :  { %2063 = vsyncpa [#allocation3], 1 }
 0xdba   :  { %2065 = vsyncpa [#allocation3 + $0x1], 1 }
 0xdbb   :  { %2066 = vsyncpa [#allocation6], 1 }
 0xdbc   :  { %2068 = vsyncpa [#allocation6 + $0x1], 1 }
 0xdbd   :  { %2069 = vsyncpa [#allocation4], 1 }
 0xdbe   :  { %2071 = vsyncpa [#allocation4 + $0x1], 1 }
 0xdbf   :  { %2072 = vsyncpa [#allocation10], 1 }
 0xdc0   :  { %2074 = vsyncpa [#allocation10 + $0x1], 1 }

</bundles_post_ra>
